<compile_context>
chip_gen: v5e
topology: v5e:2x2
jax: 0.10.0
libtpu: 0.0.40
codegen_flags: <defaults>
</compile_context>

<pallas_src>
import jax
import jax.numpy as jnp
from jax import lax
from jax.experimental import pallas as pl
from jax.experimental.pallas import tpu as pltpu

SRC_LEN   = 6     # source sequence length
TRG_LEN   = 8     # max_len (target sequence length)
BATCH     = 4
B_PAD     = 8     # batch padded to sublane width
EMB       = 32    # embedding dim (encoder and decoder)
HID       = 32    # LSTM hidden dim
SRC_VOCAB = 16
TRG_VOCAB = 16

F32  = jnp.float32
BF16 = jnp.bfloat16


def _gate_split(gates):
    """PyTorch gate order (i, f, g, o): two full-width EUP passes, static slices."""
    sig = jax.nn.sigmoid(gates)          # (B_PAD, 4H)
    th  = jnp.tanh(gates)                # (B_PAD, 4H)
    i_g = sig[:, 0 * HID:1 * HID]
    f_g = sig[:, 1 * HID:2 * HID]
    g_g = th[:,  2 * HID:3 * HID]
    o_g = sig[:, 3 * HID:4 * HID]
    return i_g, f_g, g_g, o_g


def seq2seq_kernel(tf_ref, lens_ref, src_emb_ref, trg_oh_ref,
                   wih_e_ref, whh_e_ref, b_e_ref,
                   wcomb_ref, whh_d_ref, b_d_ref,
                   wout_ref, bout_ref,
                   out_ref,
                   xg_ref, encg_ref, decg_ref):
    # ------------- hoisted loop invariants -----------------------------------
    whh_e = whh_e_ref[...]                                      # (HID, 4H) bf16
    whh_d = whh_d_ref[...]                                      # (HID, 4H) bf16
    wcomb = wcomb_ref[...]                                      # (V,   4H) bf16
    wout  = wout_ref[...]                                       # (HID, V)  bf16
    lens  = lens_ref[...]                                       # (B_PAD, 1) i32
    b_d_b = jnp.broadcast_to(b_d_ref[...],  (B_PAD, 4 * HID))   # f32
    b_o_b = jnp.broadcast_to(bout_ref[...], (B_PAD, TRG_VOCAB)) # f32
    lane  = lax.broadcasted_iota(jnp.int32, (B_PAD, TRG_VOCAB), 1)

    # ------------- encoder: all input-side gate terms in ONE matmul ----------
    encg_ref[...] = (jnp.dot(src_emb_ref[...], wih_e_ref[...],
                             preferred_element_type=F32)
                     + b_e_ref[...])                 # (SRC_LEN*B_PAD, 4H) f32

    h = jnp.zeros((B_PAD, HID), F32)
    c = jnp.zeros((B_PAD, HID), F32)
    for t in range(SRC_LEN):                         # static -> fully unrolled
        xg = encg_ref[pl.ds(t * B_PAD, B_PAD), :]
        gates = xg + jnp.dot(h.astype(BF16), whh_e, preferred_element_type=F32)
        i_g, f_g, g_g, o_g = _gate_split(gates)
        c_new = f_g * c + i_g * g_g
        h_new = o_g * jnp.tanh(c_new)
        keep = lens > t                              # freeze past src_lengths[b]
        h = jnp.where(keep, h_new, h)                # vsel, broadcast over HID
        c = jnp.where(keep, c_new, c)

    # ------------- decoder: teacher-forced x-gates for ALL steps, ONE matmul -
    decg_ref[...] = (jnp.dot(trg_oh_ref[...], wcomb,
                             preferred_element_type=F32)
                     + b_d_ref[...])                 # (TRG_LEN*B_PAD, 4H) f32

    out_ref[0] = jnp.zeros((B_PAD, TRG_VOCAB), F32)  # outputs[0] stays zero
    xg_ref[...] = decg_ref[pl.ds(0, B_PAD), :]       # input = trg[0, :]

    for t in range(1, TRG_LEN):                      # static -> fully unrolled
        gates = xg_ref[...] + jnp.dot(h.astype(BF16), whh_d,
                                      preferred_element_type=F32)
        i_g, f_g, g_g, o_g = _gate_split(gates)
        c = f_g * c + i_g * g_g
        h = o_g * jnp.tanh(c)

        logits = (jnp.dot(h.astype(BF16), wout, preferred_element_type=F32)
                  + b_o_b)                           # (B_PAD, V)
        out_ref[t] = logits

        if t + 1 < TRG_LEN:                          # next input unused on last step
            tf = tf_ref[t]

            @pl.when(tf == 1)                        # teacher forcing: precomputed
            def _():
                xg_ref[...] = decg_ref[pl.ds(t * B_PAD, B_PAD), :]

            @pl.when(tf == 0)                        # greedy: argmax -> one-hot
            def _():
                mx = jnp.max(logits, axis=1, keepdims=True)
                idx = jnp.min(jnp.where(logits >= mx, lane, TRG_VOCAB),
                              axis=1, keepdims=True)
                amax_oh = (lane == idx).astype(BF16)
                xg_ref[...] = (jnp.dot(amax_oh, wcomb,
                                       preferred_element_type=F32) + b_d_b)


def init_params(key):
    ks = jax.random.split(key, 10)
    k = 1.0 / jnp.sqrt(HID)

    def u(kk, shape):
        return jax.random.uniform(kk, shape, F32, -k, k)

    return {
        "enc_emb": jax.random.normal(ks[0], (SRC_VOCAB, EMB), F32),
        "dec_emb": jax.random.normal(ks[1], (TRG_VOCAB, EMB), F32),
        # pre-transposed LSTM weights: x @ W_ih.T == x @ wih_t
        "wih_e_t": u(ks[2], (EMB, 4 * HID)),
        "whh_e_t": u(ks[3], (HID, 4 * HID)),
        "b_e":     u(ks[4], (1, 4 * HID)),          # b_ih + b_hh combined
        "wih_d_t": u(ks[5], (EMB, 4 * HID)),
        "whh_d_t": u(ks[6], (HID, 4 * HID)),
        "b_d":     u(ks[7], (1, 4 * HID)),
        # decoder.out: Linear(HID, TRG_VOCAB), pre-transposed
        "wout_t":  u(ks[8], (HID, TRG_VOCAB)),
        "b_out":   u(ks[9], (1, TRG_VOCAB)),
    }


@jax.jit
def seq2seq_forward(src, src_lengths, trg, params, tf_flags):
    pad_b = B_PAD - BATCH

    # glue: embedding lookup + one-hot + batch padding done in plain JAX
    src_emb = params["enc_emb"][src]                                   # (S, B, E)
    src_emb = jnp.pad(src_emb, ((0, 0), (0, pad_b), (0, 0)))
    src_emb = src_emb.reshape(SRC_LEN * B_PAD, EMB).astype(BF16)

    trg_oh = jax.nn.one_hot(trg, TRG_VOCAB, dtype=F32)                 # (T, B, V)
    trg_oh = jnp.pad(trg_oh, ((0, 0), (0, pad_b), (0, 0)))
    trg_oh = trg_oh.reshape(TRG_LEN * B_PAD, TRG_VOCAB).astype(BF16)

    lengths = jnp.pad(src_lengths.astype(jnp.int32), (0, pad_b)).reshape(B_PAD, 1)

    # fuse decoder embedding lookup into the decoder input-gate matmul
    w_comb = jnp.dot(params["dec_emb"], params["wih_d_t"]).astype(BF16)  # (V, 4H)

    vmem = pl.BlockSpec(memory_space=pltpu.MemorySpace.VMEM)
    smem = pl.BlockSpec(memory_space=pltpu.MemorySpace.SMEM)

    out = pl.pallas_call(
        seq2seq_kernel,
        out_shape=jax.ShapeDtypeStruct((TRG_LEN, B_PAD, TRG_VOCAB), F32),
        in_specs=[smem,                      # teacher-forcing flags
                  vmem,                      # src_lengths (padded)
                  vmem, vmem,                # src_emb, trg_onehot (flattened)
                  vmem, vmem, vmem,          # encoder LSTM weights
                  vmem, vmem, vmem,          # fused dec input weight, whh_d, b_d
                  vmem, vmem],               # output head
        out_specs=vmem,
        scratch_shapes=[
            pltpu.VMEM((B_PAD, 4 * HID), F32),               # next-step x-gates
            pltpu.VMEM((SRC_LEN * B_PAD, 4 * HID), F32),     # encoder x-gates
            pltpu.VMEM((TRG_LEN * B_PAD, 4 * HID), F32),     # teacher-forced x-gates
        ],
    )(tf_flags.astype(jnp.int32), lengths, src_emb, trg_oh,
      params["wih_e_t"].astype(BF16), params["whh_e_t"].astype(BF16), params["b_e"],
      w_comb, params["whh_d_t"].astype(BF16), params["b_d"],
      params["wout_t"].astype(BF16), params["b_out"])

    return out[:, :BATCH, :]


if __name__ == "__main__":
    key = jax.random.PRNGKey(0)
    k_par, k_src, k_trg, k_tf = jax.random.split(key, 4)

    params = init_params(k_par)

    src = jax.random.randint(k_src, (SRC_LEN, BATCH), 0, SRC_VOCAB, jnp.int32)
    src_lengths = jnp.array([6, 5, 4, 3], dtype=jnp.int32)
    trg = jax.random.randint(k_trg, (TRG_LEN, BATCH), 0, TRG_VOCAB, jnp.int32)

    # teacher_force = torch.rand(1) < 0.5, drawn deterministically per step
    tf_flags = (jax.random.uniform(k_tf, (TRG_LEN,)) < 0.5).astype(jnp.int32)

    outputs = seq2seq_forward(src, src_lengths, trg, params, tf_flags)
    outputs = jax.block_until_ready(outputs)

    assert outputs.shape == (TRG_LEN, BATCH, TRG_VOCAB)
    assert bool(jnp.all(jnp.isfinite(outputs)))
    assert bool(jnp.all(outputs[0] == 0.0))   # outputs[0] untouched, as in the module

    print("KERNEL_OK")
</pallas_src>

<mosaic_0001>
module attributes {stable_mosaic.version = 11 : i64} {
  func.func @seq2seq_kernel(%arg0: memref<8xi32, #tpu.memory_space<smem>>, %arg1: memref<8x1xi32, #tpu.memory_space<vmem>>, %arg2: memref<48x32xbf16, #tpu.memory_space<vmem>>, %arg3: memref<64x16xbf16, #tpu.memory_space<vmem>>, %arg4: memref<32x128xbf16, #tpu.memory_space<vmem>>, %arg5: memref<32x128xbf16, #tpu.memory_space<vmem>>, %arg6: memref<1x128xf32, #tpu.memory_space<vmem>>, %arg7: memref<16x128xbf16, #tpu.memory_space<vmem>>, %arg8: memref<32x128xbf16, #tpu.memory_space<vmem>>, %arg9: memref<1x128xf32, #tpu.memory_space<vmem>>, %arg10: memref<32x16xbf16, #tpu.memory_space<vmem>>, %arg11: memref<1x16xf32, #tpu.memory_space<vmem>>, %arg12: memref<8x8x16xf32, #tpu.memory_space<vmem>>, %arg13: memref<8x128xf32, #tpu.memory_space<vmem>>, %arg14: memref<48x128xf32, #tpu.memory_space<vmem>>, %arg15: memref<64x128xf32, #tpu.memory_space<vmem>>) attributes {dimension_semantics = [], scalar_prefetch = 0 : i64, scratch_operands = 3 : i64, tpu.core_type = #tpu.core_type<tc>} {
    %c0 = arith.constant 0 : index
    %c0_0 = arith.constant 0 : index
    %0 = vector.load %arg5[%c0, %c0_0] : memref<32x128xbf16, #tpu.memory_space<vmem>>, vector<32x128xbf16>
    %c0_1 = arith.constant 0 : index
    %c0_2 = arith.constant 0 : index
    %1 = vector.load %arg8[%c0_1, %c0_2] : memref<32x128xbf16, #tpu.memory_space<vmem>>, vector<32x128xbf16>
    %c0_3 = arith.constant 0 : index
    %c0_4 = arith.constant 0 : index
    %2 = vector.load %arg7[%c0_3, %c0_4] : memref<16x128xbf16, #tpu.memory_space<vmem>>, vector<16x128xbf16>
    %c0_5 = arith.constant 0 : index
    %c0_6 = arith.constant 0 : index
    %3 = vector.load %arg10[%c0_5, %c0_6] : memref<32x16xbf16, #tpu.memory_space<vmem>>, vector<32x16xbf16>
    %c0_7 = arith.constant 0 : index
    %c0_8 = arith.constant 0 : index
    %4 = vector.load %arg1[%c0_7, %c0_8] : memref<8x1xi32, #tpu.memory_space<vmem>>, vector<8x1xi32>
    %c0_9 = arith.constant 0 : index
    %c0_10 = arith.constant 0 : index
    %5 = vector.load %arg9[%c0_9, %c0_10] : memref<1x128xf32, #tpu.memory_space<vmem>>, vector<1x128xf32>
    %6 = vector.shape_cast %5 : vector<1x128xf32> to vector<1x128xf32>
    %7 = vector.broadcast %6 : vector<1x128xf32> to vector<8x128xf32>
    %c0_11 = arith.constant 0 : index
    %c0_12 = arith.constant 0 : index
    %8 = vector.load %arg11[%c0_11, %c0_12] : memref<1x16xf32, #tpu.memory_space<vmem>>, vector<1x16xf32>
    %9 = vector.shape_cast %8 : vector<1x16xf32> to vector<1x16xf32>
    %10 = vector.broadcast %9 : vector<1x16xf32> to vector<8x16xf32>
    %11 = tpu.iota {dimensions = array<i32: 1>} : vector<8x16xi32>
    %c0_13 = arith.constant 0 : index
    %c0_14 = arith.constant 0 : index
    %12 = vector.load %arg2[%c0_13, %c0_14] : memref<48x32xbf16, #tpu.memory_space<vmem>>, vector<48x32xbf16>
    %c0_15 = arith.constant 0 : index
    %c0_16 = arith.constant 0 : index
    %13 = vector.load %arg4[%c0_15, %c0_16] : memref<32x128xbf16, #tpu.memory_space<vmem>>, vector<32x128xbf16>
    %cst = arith.constant dense<0.000000e+00> : vector<48x128xf32>
    %14 = tpu.matmul %12, %13, %cst {dimension_numbers = #tpu.dot_dimension_numbers<[1], [0], [0], [1], [0, 0, 1, 1], [], []>} : vector<48x32xbf16>, vector<32x128xbf16>, vector<48x128xf32> -> vector<48x128xf32>
    %c0_17 = arith.constant 0 : index
    %c0_18 = arith.constant 0 : index
    %15 = vector.load %arg6[%c0_17, %c0_18] : memref<1x128xf32, #tpu.memory_space<vmem>>, vector<1x128xf32>
    %16 = vector.broadcast %15 : vector<1x128xf32> to vector<48x128xf32>
    %17 = arith.addf %14, %16 : vector<48x128xf32>
    %c0_19 = arith.constant 0 : index
    %c0_20 = arith.constant 0 : index
    %18 = vector.load %arg14[%c0_19, %c0_20] : memref<48x128xf32, #tpu.memory_space<vmem>>, vector<48x128xf32>
    tpu.vector_store %arg14[%c0_19, %c0_20], %17 {strides = array<i32>} : memref<48x128xf32, #tpu.memory_space<vmem>>, vector<48x128xf32>,
    %cst_21 = arith.constant 0.000000e+00 : f32
    %19 = vector.broadcast %cst_21 : f32 to vector<8x32xf32>
    %cst_22 = arith.constant 0.000000e+00 : f32
    %20 = vector.broadcast %cst_22 : f32 to vector<8x32xf32>
    %c0_23 = arith.constant 0 : index
    %c0_24 = arith.constant 0 : index
    %21 = vector.load %arg14[%c0_23, %c0_24] : memref<48x128xf32, #tpu.memory_space<vmem>>, vector<8x128xf32>
    %22 = arith.truncf %19 : vector<8x32xf32> to vector<8x32xbf16>
    %cst_25 = arith.constant dense<0.000000e+00> : vector<8x128xf32>
    %23 = tpu.matmul %22, %0, %cst_25 {dimension_numbers = #tpu.dot_dimension_numbers<[1], [0], [0], [1], [0, 0, 1, 1], [], []>} : vector<8x32xbf16>, vector<32x128xbf16>, vector<8x128xf32> -> vector<8x128xf32>
    %24 = arith.addf %21, %23 : vector<8x128xf32>
    %25 = arith.negf %24 : vector<8x128xf32>
    %26 = math.exp %25 : vector<8x128xf32>
    %cst_26 = arith.constant 1.000000e+00 : f32
    %27 = vector.broadcast %cst_26 : f32 to vector<8x128xf32>
    %28 = arith.addf %27, %26 : vector<8x128xf32>
    %29 = arith.divf %27, %28 : vector<8x128xf32>
    %30 = math.tanh %24 : vector<8x128xf32>
    %31 = vector.extract_strided_slice %29 {offsets = [0, 0], sizes = [8, 32], strides = [1, 1]} : vector<8x128xf32> to vector<8x32xf32>
    %32 = vector.extract_strided_slice %29 {offsets = [0, 32], sizes = [8, 32], strides = [1, 1]} : vector<8x128xf32> to vector<8x32xf32>
    %33 = vector.extract_strided_slice %30 {offsets = [0, 64], sizes = [8, 32], strides = [1, 1]} : vector<8x128xf32> to vector<8x32xf32>
    %34 = vector.extract_strided_slice %29 {offsets = [0, 96], sizes = [8, 32], strides = [1, 1]} : vector<8x128xf32> to vector<8x32xf32>
    %35 = arith.mulf %32, %20 : vector<8x32xf32>
    %36 = arith.mulf %31, %33 : vector<8x32xf32>
    %37 = arith.addf %35, %36 : vector<8x32xf32>
    %38 = math.tanh %37 : vector<8x32xf32>
    %39 = arith.mulf %34, %38 : vector<8x32xf32>
    %c0_i32 = arith.constant 0 : i32
    %40 = vector.broadcast %c0_i32 : i32 to vector<8x1xi32>
    %41 = arith.cmpi sgt, %4, %40 : vector<8x1xi32>
    %42 = vector.shape_cast %41 : vector<8x1xi1> to vector<8x1xi1>
    %43 = vector.broadcast %42 : vector<8x1xi1> to vector<8x32xi1>
    %44 = arith.select %43, %39, %19 : vector<8x32xi1>, vector<8x32xf32>
    %45 = vector.shape_cast %41 : vector<8x1xi1> to vector<8x1xi1>
    %46 = vector.broadcast %45 : vector<8x1xi1> to vector<8x32xi1>
    %47 = arith.select %46, %37, %20 : vector<8x32xi1>, vector<8x32xf32>
    %c8 = arith.constant 8 : index
    %c0_27 = arith.constant 0 : index
    %48 = vector.load %arg14[%c8, %c0_27] : memref<48x128xf32, #tpu.memory_space<vmem>>, vector<8x128xf32>
    %49 = arith.truncf %44 : vector<8x32xf32> to vector<8x32xbf16>
    %cst_28 = arith.constant dense<0.000000e+00> : vector<8x128xf32>
    %50 = tpu.matmul %49, %0, %cst_28 {dimension_numbers = #tpu.dot_dimension_numbers<[1], [0], [0], [1], [0, 0, 1, 1], [], []>} : vector<8x32xbf16>, vector<32x128xbf16>, vector<8x128xf32> -> vector<8x128xf32>
    %51 = arith.addf %48, %50 : vector<8x128xf32>
    %52 = arith.negf %51 : vector<8x128xf32>
    %53 = math.exp %52 : vector<8x128xf32>
    %cst_29 = arith.constant 1.000000e+00 : f32
    %54 = vector.broadcast %cst_29 : f32 to vector<8x128xf32>
    %55 = arith.addf %54, %53 : vector<8x128xf32>
    %56 = arith.divf %54, %55 : vector<8x128xf32>
    %57 = math.tanh %51 : vector<8x128xf32>
    %58 = vector.extract_strided_slice %56 {offsets = [0, 0], sizes = [8, 32], strides = [1, 1]} : vector<8x128xf32> to vector<8x32xf32>
    %59 = vector.extract_strided_slice %56 {offsets = [0, 32], sizes = [8, 32], strides = [1, 1]} : vector<8x128xf32> to vector<8x32xf32>
    %60 = vector.extract_strided_slice %57 {offsets = [0, 64], sizes = [8, 32], strides = [1, 1]} : vector<8x128xf32> to vector<8x32xf32>
    %61 = vector.extract_strided_slice %56 {offsets = [0, 96], sizes = [8, 32], strides = [1, 1]} : vector<8x128xf32> to vector<8x32xf32>
    %62 = arith.mulf %59, %47 : vector<8x32xf32>
    %63 = arith.mulf %58, %60 : vector<8x32xf32>
    %64 = arith.addf %62, %63 : vector<8x32xf32>
    %65 = math.tanh %64 : vector<8x32xf32>
    %66 = arith.mulf %61, %65 : vector<8x32xf32>
    %c1_i32 = arith.constant 1 : i32
    %67 = vector.broadcast %c1_i32 : i32 to vector<8x1xi32>
    %68 = arith.cmpi sgt, %4, %67 : vector<8x1xi32>
    %69 = vector.shape_cast %68 : vector<8x1xi1> to vector<8x1xi1>
    %70 = vector.broadcast %69 : vector<8x1xi1> to vector<8x32xi1>
    %71 = arith.select %70, %66, %44 : vector<8x32xi1>, vector<8x32xf32>
    %72 = vector.shape_cast %68 : vector<8x1xi1> to vector<8x1xi1>
    %73 = vector.broadcast %72 : vector<8x1xi1> to vector<8x32xi1>
    %74 = arith.select %73, %64, %47 : vector<8x32xi1>, vector<8x32xf32>
    %c16 = arith.constant 16 : index
    %c0_30 = arith.constant 0 : index
    %75 = vector.load %arg14[%c16, %c0_30] : memref<48x128xf32, #tpu.memory_space<vmem>>, vector<8x128xf32>
    %76 = arith.truncf %71 : vector<8x32xf32> to vector<8x32xbf16>
    %cst_31 = arith.constant dense<0.000000e+00> : vector<8x128xf32>
    %77 = tpu.matmul %76, %0, %cst_31 {dimension_numbers = #tpu.dot_dimension_numbers<[1], [0], [0], [1], [0, 0, 1, 1], [], []>} : vector<8x32xbf16>, vector<32x128xbf16>, vector<8x128xf32> -> vector<8x128xf32>
    %78 = arith.addf %75, %77 : vector<8x128xf32>
    %79 = arith.negf %78 : vector<8x128xf32>
    %80 = math.exp %79 : vector<8x128xf32>
    %cst_32 = arith.constant 1.000000e+00 : f32
    %81 = vector.broadcast %cst_32 : f32 to vector<8x128xf32>
    %82 = arith.addf %81, %80 : vector<8x128xf32>
    %83 = arith.divf %81, %82 : vector<8x128xf32>
    %84 = math.tanh %78 : vector<8x128xf32>
    %85 = vector.extract_strided_slice %83 {offsets = [0, 0], sizes = [8, 32], strides = [1, 1]} : vector<8x128xf32> to vector<8x32xf32>
    %86 = vector.extract_strided_slice %83 {offsets = [0, 32], sizes = [8, 32], strides = [1, 1]} : vector<8x128xf32> to vector<8x32xf32>
    %87 = vector.extract_strided_slice %84 {offsets = [0, 64], sizes = [8, 32], strides = [1, 1]} : vector<8x128xf32> to vector<8x32xf32>
    %88 = vector.extract_strided_slice %83 {offsets = [0, 96], sizes = [8, 32], strides = [1, 1]} : vector<8x128xf32> to vector<8x32xf32>
    %89 = arith.mulf %86, %74 : vector<8x32xf32>
    %90 = arith.mulf %85, %87 : vector<8x32xf32>
    %91 = arith.addf %89, %90 : vector<8x32xf32>
    %92 = math.tanh %91 : vector<8x32xf32>
    %93 = arith.mulf %88, %92 : vector<8x32xf32>
    %c2_i32 = arith.constant 2 : i32
    %94 = vector.broadcast %c2_i32 : i32 to vector<8x1xi32>
    %95 = arith.cmpi sgt, %4, %94 : vector<8x1xi32>
    %96 = vector.shape_cast %95 : vector<8x1xi1> to vector<8x1xi1>
    %97 = vector.broadcast %96 : vector<8x1xi1> to vector<8x32xi1>
    %98 = arith.select %97, %93, %71 : vector<8x32xi1>, vector<8x32xf32>
    %99 = vector.shape_cast %95 : vector<8x1xi1> to vector<8x1xi1>
    %100 = vector.broadcast %99 : vector<8x1xi1> to vector<8x32xi1>
    %101 = arith.select %100, %91, %74 : vector<8x32xi1>, vector<8x32xf32>
    %c24 = arith.constant 24 : index
    %c0_33 = arith.constant 0 : index
    %102 = vector.load %arg14[%c24, %c0_33] : memref<48x128xf32, #tpu.memory_space<vmem>>, vector<8x128xf32>
    %103 = arith.truncf %98 : vector<8x32xf32> to vector<8x32xbf16>
    %cst_34 = arith.constant dense<0.000000e+00> : vector<8x128xf32>
    %104 = tpu.matmul %103, %0, %cst_34 {dimension_numbers = #tpu.dot_dimension_numbers<[1], [0], [0], [1], [0, 0, 1, 1], [], []>} : vector<8x32xbf16>, vector<32x128xbf16>, vector<8x128xf32> -> vector<8x128xf32>
    %105 = arith.addf %102, %104 : vector<8x128xf32>
    %106 = arith.negf %105 : vector<8x128xf32>
    %107 = math.exp %106 : vector<8x128xf32>
    %cst_35 = arith.constant 1.000000e+00 : f32
    %108 = vector.broadcast %cst_35 : f32 to vector<8x128xf32>
    %109 = arith.addf %108, %107 : vector<8x128xf32>
    %110 = arith.divf %108, %109 : vector<8x128xf32>
    %111 = math.tanh %105 : vector<8x128xf32>
    %112 = vector.extract_strided_slice %110 {offsets = [0, 0], sizes = [8, 32], strides = [1, 1]} : vector<8x128xf32> to vector<8x32xf32>
    %113 = vector.extract_strided_slice %110 {offsets = [0, 32], sizes = [8, 32], strides = [1, 1]} : vector<8x128xf32> to vector<8x32xf32>
    %114 = vector.extract_strided_slice %111 {offsets = [0, 64], sizes = [8, 32], strides = [1, 1]} : vector<8x128xf32> to vector<8x32xf32>
    %115 = vector.extract_strided_slice %110 {offsets = [0, 96], sizes = [8, 32], strides = [1, 1]} : vector<8x128xf32> to vector<8x32xf32>
    %116 = arith.mulf %113, %101 : vector<8x32xf32>
    %117 = arith.mulf %112, %114 : vector<8x32xf32>
    %118 = arith.addf %116, %117 : vector<8x32xf32>
    %119 = math.tanh %118 : vector<8x32xf32>
    %120 = arith.mulf %115, %119 : vector<8x32xf32>
    %c3_i32 = arith.constant 3 : i32
    %121 = vector.broadcast %c3_i32 : i32 to vector<8x1xi32>
    %122 = arith.cmpi sgt, %4, %121 : vector<8x1xi32>
    %123 = vector.shape_cast %122 : vector<8x1xi1> to vector<8x1xi1>
    %124 = vector.broadcast %123 : vector<8x1xi1> to vector<8x32xi1>
    %125 = arith.select %124, %120, %98 : vector<8x32xi1>, vector<8x32xf32>
    %126 = vector.shape_cast %122 : vector<8x1xi1> to vector<8x1xi1>
    %127 = vector.broadcast %126 : vector<8x1xi1> to vector<8x32xi1>
    %128 = arith.select %127, %118, %101 : vector<8x32xi1>, vector<8x32xf32>
    %c32 = arith.constant 32 : index
    %c0_36 = arith.constant 0 : index
    %129 = vector.load %arg14[%c32, %c0_36] : memref<48x128xf32, #tpu.memory_space<vmem>>, vector<8x128xf32>
    %130 = arith.truncf %125 : vector<8x32xf32> to vector<8x32xbf16>
    %cst_37 = arith.constant dense<0.000000e+00> : vector<8x128xf32>
    %131 = tpu.matmul %130, %0, %cst_37 {dimension_numbers = #tpu.dot_dimension_numbers<[1], [0], [0], [1], [0, 0, 1, 1], [], []>} : vector<8x32xbf16>, vector<32x128xbf16>, vector<8x128xf32> -> vector<8x128xf32>
    %132 = arith.addf %129, %131 : vector<8x128xf32>
    %133 = arith.negf %132 : vector<8x128xf32>
    %134 = math.exp %133 : vector<8x128xf32>
    %cst_38 = arith.constant 1.000000e+00 : f32
    %135 = vector.broadcast %cst_38 : f32 to vector<8x128xf32>
    %136 = arith.addf %135, %134 : vector<8x128xf32>
    %137 = arith.divf %135, %136 : vector<8x128xf32>
    %138 = math.tanh %132 : vector<8x128xf32>
    %139 = vector.extract_strided_slice %137 {offsets = [0, 0], sizes = [8, 32], strides = [1, 1]} : vector<8x128xf32> to vector<8x32xf32>
    %140 = vector.extract_strided_slice %137 {offsets = [0, 32], sizes = [8, 32], strides = [1, 1]} : vector<8x128xf32> to vector<8x32xf32>
    %141 = vector.extract_strided_slice %138 {offsets = [0, 64], sizes = [8, 32], strides = [1, 1]} : vector<8x128xf32> to vector<8x32xf32>
    %142 = vector.extract_strided_slice %137 {offsets = [0, 96], sizes = [8, 32], strides = [1, 1]} : vector<8x128xf32> to vector<8x32xf32>
    %143 = arith.mulf %140, %128 : vector<8x32xf32>
    %144 = arith.mulf %139, %141 : vector<8x32xf32>
    %145 = arith.addf %143, %144 : vector<8x32xf32>
    %146 = math.tanh %145 : vector<8x32xf32>
    %147 = arith.mulf %142, %146 : vector<8x32xf32>
    %c4_i32 = arith.constant 4 : i32
    %148 = vector.broadcast %c4_i32 : i32 to vector<8x1xi32>
    %149 = arith.cmpi sgt, %4, %148 : vector<8x1xi32>
    %150 = vector.shape_cast %149 : vector<8x1xi1> to vector<8x1xi1>
    %151 = vector.broadcast %150 : vector<8x1xi1> to vector<8x32xi1>
    %152 = arith.select %151, %147, %125 : vector<8x32xi1>, vector<8x32xf32>
    %153 = vector.shape_cast %149 : vector<8x1xi1> to vector<8x1xi1>
    %154 = vector.broadcast %153 : vector<8x1xi1> to vector<8x32xi1>
    %155 = arith.select %154, %145, %128 : vector<8x32xi1>, vector<8x32xf32>
    %c40 = arith.constant 40 : index
    %c0_39 = arith.constant 0 : index
    %156 = vector.load %arg14[%c40, %c0_39] : memref<48x128xf32, #tpu.memory_space<vmem>>, vector<8x128xf32>
    %157 = arith.truncf %152 : vector<8x32xf32> to vector<8x32xbf16>
    %cst_40 = arith.constant dense<0.000000e+00> : vector<8x128xf32>
    %158 = tpu.matmul %157, %0, %cst_40 {dimension_numbers = #tpu.dot_dimension_numbers<[1], [0], [0], [1], [0, 0, 1, 1], [], []>} : vector<8x32xbf16>, vector<32x128xbf16>, vector<8x128xf32> -> vector<8x128xf32>
    %159 = arith.addf %156, %158 : vector<8x128xf32>
    %160 = arith.negf %159 : vector<8x128xf32>
    %161 = math.exp %160 : vector<8x128xf32>
    %cst_41 = arith.constant 1.000000e+00 : f32
    %162 = vector.broadcast %cst_41 : f32 to vector<8x128xf32>
    %163 = arith.addf %162, %161 : vector<8x128xf32>
    %164 = arith.divf %162, %163 : vector<8x128xf32>
    %165 = math.tanh %159 : vector<8x128xf32>
    %166 = vector.extract_strided_slice %164 {offsets = [0, 0], sizes = [8, 32], strides = [1, 1]} : vector<8x128xf32> to vector<8x32xf32>
    %167 = vector.extract_strided_slice %164 {offsets = [0, 32], sizes = [8, 32], strides = [1, 1]} : vector<8x128xf32> to vector<8x32xf32>
    %168 = vector.extract_strided_slice %165 {offsets = [0, 64], sizes = [8, 32], strides = [1, 1]} : vector<8x128xf32> to vector<8x32xf32>
    %169 = vector.extract_strided_slice %164 {offsets = [0, 96], sizes = [8, 32], strides = [1, 1]} : vector<8x128xf32> to vector<8x32xf32>
    %170 = arith.mulf %167, %155 : vector<8x32xf32>
    %171 = arith.mulf %166, %168 : vector<8x32xf32>
    %172 = arith.addf %170, %171 : vector<8x32xf32>
    %173 = math.tanh %172 : vector<8x32xf32>
    %174 = arith.mulf %169, %173 : vector<8x32xf32>
    %c5_i32 = arith.constant 5 : i32
    %175 = vector.broadcast %c5_i32 : i32 to vector<8x1xi32>
    %176 = arith.cmpi sgt, %4, %175 : vector<8x1xi32>
    %177 = vector.shape_cast %176 : vector<8x1xi1> to vector<8x1xi1>
    %178 = vector.broadcast %177 : vector<8x1xi1> to vector<8x32xi1>
    %179 = arith.select %178, %174, %152 : vector<8x32xi1>, vector<8x32xf32>
    %180 = vector.shape_cast %176 : vector<8x1xi1> to vector<8x1xi1>
    %181 = vector.broadcast %180 : vector<8x1xi1> to vector<8x32xi1>
    %182 = arith.select %181, %172, %155 : vector<8x32xi1>, vector<8x32xf32>
    %c0_42 = arith.constant 0 : index
    %c0_43 = arith.constant 0 : index
    %183 = vector.load %arg3[%c0_42, %c0_43] : memref<64x16xbf16, #tpu.memory_space<vmem>>, vector<64x16xbf16>
    %cst_44 = arith.constant dense<0.000000e+00> : vector<64x128xf32>
    %184 = tpu.matmul %183, %2, %cst_44 {dimension_numbers = #tpu.dot_dimension_numbers<[1], [0], [0], [1], [0, 0, 1, 1], [], []>} : vector<64x16xbf16>, vector<16x128xbf16>, vector<64x128xf32> -> vector<64x128xf32>
    %c0_45 = arith.constant 0 : index
    %c0_46 = arith.constant 0 : index
    %185 = vector.load %arg9[%c0_45, %c0_46] : memref<1x128xf32, #tpu.memory_space<vmem>>, vector<1x128xf32>
    %186 = vector.broadcast %185 : vector<1x128xf32> to vector<64x128xf32>
    %187 = arith.addf %184, %186 : vector<64x128xf32>
    %c0_47 = arith.constant 0 : index
    %c0_48 = arith.constant 0 : index
    %188 = vector.load %arg15[%c0_47, %c0_48] : memref<64x128xf32, #tpu.memory_space<vmem>>, vector<64x128xf32>
    tpu.vector_store %arg15[%c0_47, %c0_48], %187 {strides = array<i32>} : memref<64x128xf32, #tpu.memory_space<vmem>>, vector<64x128xf32>,
    %cst_49 = arith.constant 0.000000e+00 : f32
    %189 = vector.broadcast %cst_49 : f32 to vector<8x16xf32>
    %c0_50 = arith.constant 0 : index
    %c0_51 = arith.constant 0 : index
    %c0_52 = arith.constant 0 : index
    %190 = vector.load %arg12[%c0_50, %c0_51, %c0_52] : memref<8x8x16xf32, #tpu.memory_space<vmem>>, vector<1x8x16xf32>
    %191 = vector.shape_cast %190 : vector<1x8x16xf32> to vector<8x16xf32>
    %192 = vector.shape_cast %189 : vector<8x16xf32> to vector<1x8x16xf32>
    tpu.vector_store %arg12[%c0_50, %c0_51, %c0_52], %192 {strides = array<i32>} : memref<8x8x16xf32, #tpu.memory_space<vmem>>, vector<1x8x16xf32>,
    %c0_53 = arith.constant 0 : index
    %c0_54 = arith.constant 0 : index
    %193 = vector.load %arg15[%c0_53, %c0_54] : memref<64x128xf32, #tpu.memory_space<vmem>>, vector<8x128xf32>
    %c0_55 = arith.constant 0 : index
    %c0_56 = arith.constant 0 : index
    %194 = vector.load %arg13[%c0_55, %c0_56] : memref<8x128xf32, #tpu.memory_space<vmem>>, vector<8x128xf32>
    tpu.vector_store %arg13[%c0_55, %c0_56], %193 {strides = array<i32>} : memref<8x128xf32, #tpu.memory_space<vmem>>, vector<8x128xf32>,
    %c0_57 = arith.constant 0 : index
    %c0_58 = arith.constant 0 : index
    %195 = vector.load %arg13[%c0_57, %c0_58] : memref<8x128xf32, #tpu.memory_space<vmem>>, vector<8x128xf32>
    %196 = arith.truncf %179 : vector<8x32xf32> to vector<8x32xbf16>
    %cst_59 = arith.constant dense<0.000000e+00> : vector<8x128xf32>
    %197 = tpu.matmul %196, %1, %cst_59 {dimension_numbers = #tpu.dot_dimension_numbers<[1], [0], [0], [1], [0, 0, 1, 1], [], []>} : vector<8x32xbf16>, vector<32x128xbf16>, vector<8x128xf32> -> vector<8x128xf32>
    %198 = arith.addf %195, %197 : vector<8x128xf32>
    %199 = arith.negf %198 : vector<8x128xf32>
    %200 = math.exp %199 : vector<8x128xf32>
    %cst_60 = arith.constant 1.000000e+00 : f32
    %201 = vector.broadcast %cst_60 : f32 to vector<8x128xf32>
    %202 = arith.addf %201, %200 : vector<8x128xf32>
    %203 = arith.divf %201, %202 : vector<8x128xf32>
    %204 = math.tanh %198 : vector<8x128xf32>
    %205 = vector.extract_strided_slice %203 {offsets = [0, 0], sizes = [8, 32], strides = [1, 1]} : vector<8x128xf32> to vector<8x32xf32>
    %206 = vector.extract_strided_slice %203 {offsets = [0, 32], sizes = [8, 32], strides = [1, 1]} : vector<8x128xf32> to vector<8x32xf32>
    %207 = vector.extract_strided_slice %204 {offsets = [0, 64], sizes = [8, 32], strides = [1, 1]} : vector<8x128xf32> to vector<8x32xf32>
    %208 = vector.extract_strided_slice %203 {offsets = [0, 96], sizes = [8, 32], strides = [1, 1]} : vector<8x128xf32> to vector<8x32xf32>
    %209 = arith.mulf %206, %182 : vector<8x32xf32>
    %210 = arith.mulf %205, %207 : vector<8x32xf32>
    %211 = arith.addf %209, %210 : vector<8x32xf32>
    %212 = math.tanh %211 : vector<8x32xf32>
    %213 = arith.mulf %208, %212 : vector<8x32xf32>
    %214 = arith.truncf %213 : vector<8x32xf32> to vector<8x32xbf16>
    %cst_61 = arith.constant dense<0.000000e+00> : vector<8x16xf32>
    %215 = tpu.matmul %214, %3, %cst_61 {dimension_numbers = #tpu.dot_dimension_numbers<[1], [0], [0], [1], [0, 0, 1, 1], [], []>} : vector<8x32xbf16>, vector<32x16xbf16>, vector<8x16xf32> -> vector<8x16xf32>
    %216 = arith.addf %215, %10 : vector<8x16xf32>
    %c1 = arith.constant 1 : index
    %c0_62 = arith.constant 0 : index
    %c0_63 = arith.constant 0 : index
    %217 = vector.load %arg12[%c1, %c0_62, %c0_63] : memref<8x8x16xf32, #tpu.memory_space<vmem>>, vector<1x8x16xf32>
    %218 = vector.shape_cast %217 : vector<1x8x16xf32> to vector<8x16xf32>
    %219 = vector.shape_cast %216 : vector<8x16xf32> to vector<1x8x16xf32>
    tpu.vector_store %arg12[%c1, %c0_62, %c0_63], %219 {strides = array<i32>} : memref<8x8x16xf32, #tpu.memory_space<vmem>>, vector<1x8x16xf32>,
    %c1_64 = arith.constant 1 : index
    %220 = memref.load %arg0[%c1_64] : memref<8xi32, #tpu.memory_space<smem>>
    %c1_i32_65 = arith.constant 1 : i32
    %221 = arith.cmpi eq, %220, %c1_i32_65 : i32
    %222 = arith.extui %221 : i1 to i32
    %c0_i32_66 = arith.constant 0 : i32
    %223 = arith.cmpi ne, %222, %c0_i32_66 : i32
    scf.if %223 {
      %c8_136 = arith.constant 8 : index
      %c0_137 = arith.constant 0 : index
      %412 = vector.load %arg15[%c8_136, %c0_137] : memref<64x128xf32, #tpu.memory_space<vmem>>, vector<8x128xf32>
      %c0_138 = arith.constant 0 : index
      %c0_139 = arith.constant 0 : index
      %413 = vector.load %arg13[%c0_138, %c0_139] : memref<8x128xf32, #tpu.memory_space<vmem>>, vector<8x128xf32>
      tpu.vector_store %arg13[%c0_138, %c0_139], %412 {strides = array<i32>} : memref<8x128xf32, #tpu.memory_space<vmem>>, vector<8x128xf32>,
    } else {
    }
    %c0_i32_67 = arith.constant 0 : i32
    %224 = arith.cmpi eq, %220, %c0_i32_67 : i32
    %225 = arith.extui %224 : i1 to i32
    %c0_i32_68 = arith.constant 0 : i32
    %226 = arith.cmpi ne, %225, %c0_i32_68 : i32
    scf.if %226 {
      %cst_136 = arith.constant dense<0xFF800000> : vector<8xf32>
      %412 = vector.multi_reduction <maximumf>, %216, %cst_136 [1] : vector<8x16xf32> to vector<8xf32>
      %413 = vector.shape_cast %412 : vector<8xf32> to vector<8x1xf32>
      %414 = vector.broadcast %413 : vector<8x1xf32> to vector<8x16xf32>
      %415 = arith.cmpf oge, %216, %414 : vector<8x16xf32>
      %c16_i32 = arith.constant 16 : i32
      %416 = vector.broadcast %c16_i32 : i32 to vector<8x16xi32>
      %417 = arith.select %415, %11, %416 : vector<8x16xi1>, vector<8x16xi32>
      %cst_137 = arith.constant dense<2147483647> : vector<8xi32>
      %418 = vector.multi_reduction <minsi>, %417, %cst_137 [1] : vector<8x16xi32> to vector<8xi32>
      %419 = vector.shape_cast %418 : vector<8xi32> to vector<8x1xi32>
      %420 = vector.broadcast %419 : vector<8x1xi32> to vector<8x16xi32>
      %421 = arith.cmpi eq, %11, %420 : vector<8x16xi32>
      %422 = arith.extui %421 : vector<8x16xi1> to vector<8x16xi32>
      %423 = arith.sitofp %422 : vector<8x16xi32> to vector<8x16xf32>
      %424 = arith.truncf %423 : vector<8x16xf32> to vector<8x16xbf16>
      %cst_138 = arith.constant dense<0.000000e+00> : vector<8x128xf32>
      %425 = tpu.matmul %424, %2, %cst_138 {dimension_numbers = #tpu.dot_dimension_numbers<[1], [0], [0], [1], [0, 0, 1, 1], [], []>} : vector<8x16xbf16>, vector<16x128xbf16>, vector<8x128xf32> -> vector<8x128xf32>
      %426 = arith.addf %425, %7 : vector<8x128xf32>
      %c0_139 = arith.constant 0 : index
      %c0_140 = arith.constant 0 : index
      %427 = vector.load %arg13[%c0_139, %c0_140] : memref<8x128xf32, #tpu.memory_space<vmem>>, vector<8x128xf32>
      tpu.vector_store %arg13[%c0_139, %c0_140], %426 {strides = array<i32>} : memref<8x128xf32, #tpu.memory_space<vmem>>, vector<8x128xf32>,
    } else {
    }
    %c0_69 = arith.constant 0 : index
    %c0_70 = arith.constant 0 : index
    %227 = vector.load %arg13[%c0_69, %c0_70] : memref<8x128xf32, #tpu.memory_space<vmem>>, vector<8x128xf32>
    %228 = arith.truncf %213 : vector<8x32xf32> to vector<8x32xbf16>
    %cst_71 = arith.constant dense<0.000000e+00> : vector<8x128xf32>
    %229 = tpu.matmul %228, %1, %cst_71 {dimension_numbers = #tpu.dot_dimension_numbers<[1], [0], [0], [1], [0, 0, 1, 1], [], []>} : vector<8x32xbf16>, vector<32x128xbf16>, vector<8x128xf32> -> vector<8x128xf32>
    %230 = arith.addf %227, %229 : vector<8x128xf32>
    %231 = arith.negf %230 : vector<8x128xf32>
    %232 = math.exp %231 : vector<8x128xf32>
    %cst_72 = arith.constant 1.000000e+00 : f32
    %233 = vector.broadcast %cst_72 : f32 to vector<8x128xf32>
    %234 = arith.addf %233, %232 : vector<8x128xf32>
    %235 = arith.divf %233, %234 : vector<8x128xf32>
    %236 = math.tanh %230 : vector<8x128xf32>
    %237 = vector.extract_strided_slice %235 {offsets = [0, 0], sizes = [8, 32], strides = [1, 1]} : vector<8x128xf32> to vector<8x32xf32>
    %238 = vector.extract_strided_slice %235 {offsets = [0, 32], sizes = [8, 32], strides = [1, 1]} : vector<8x128xf32> to vector<8x32xf32>
    %239 = vector.extract_strided_slice %236 {offsets = [0, 64], sizes = [8, 32], strides = [1, 1]} : vector<8x128xf32> to vector<8x32xf32>
    %240 = vector.extract_strided_slice %235 {offsets = [0, 96], sizes = [8, 32], strides = [1, 1]} : vector<8x128xf32> to vector<8x32xf32>
    %241 = arith.mulf %238, %211 : vector<8x32xf32>
    %242 = arith.mulf %237, %239 : vector<8x32xf32>
    %243 = arith.addf %241, %242 : vector<8x32xf32>
    %244 = math.tanh %243 : vector<8x32xf32>
    %245 = arith.mulf %240, %244 : vector<8x32xf32>
    %246 = arith.truncf %245 : vector<8x32xf32> to vector<8x32xbf16>
    %cst_73 = arith.constant dense<0.000000e+00> : vector<8x16xf32>
    %247 = tpu.matmul %246, %3, %cst_73 {dimension_numbers = #tpu.dot_dimension_numbers<[1], [0], [0], [1], [0, 0, 1, 1], [], []>} : vector<8x32xbf16>, vector<32x16xbf16>, vector<8x16xf32> -> vector<8x16xf32>
    %248 = arith.addf %247, %10 : vector<8x16xf32>
    %c2 = arith.constant 2 : index
    %c0_74 = arith.constant 0 : index
    %c0_75 = arith.constant 0 : index
    %249 = vector.load %arg12[%c2, %c0_74, %c0_75] : memref<8x8x16xf32, #tpu.memory_space<vmem>>, vector<1x8x16xf32>
    %250 = vector.shape_cast %249 : vector<1x8x16xf32> to vector<8x16xf32>
    %251 = vector.shape_cast %248 : vector<8x16xf32> to vector<1x8x16xf32>
    tpu.vector_store %arg12[%c2, %c0_74, %c0_75], %251 {strides = array<i32>} : memref<8x8x16xf32, #tpu.memory_space<vmem>>, vector<1x8x16xf32>,
    %c2_76 = arith.constant 2 : index
    %252 = memref.load %arg0[%c2_76] : memref<8xi32, #tpu.memory_space<smem>>
    %c1_i32_77 = arith.constant 1 : i32
    %253 = arith.cmpi eq, %252, %c1_i32_77 : i32
    %254 = arith.extui %253 : i1 to i32
    %c0_i32_78 = arith.constant 0 : i32
    %255 = arith.cmpi ne, %254, %c0_i32_78 : i32
    scf.if %255 {
      %c16_136 = arith.constant 16 : index
      %c0_137 = arith.constant 0 : index
      %412 = vector.load %arg15[%c16_136, %c0_137] : memref<64x128xf32, #tpu.memory_space<vmem>>, vector<8x128xf32>
      %c0_138 = arith.constant 0 : index
      %c0_139 = arith.constant 0 : index
      %413 = vector.load %arg13[%c0_138, %c0_139] : memref<8x128xf32, #tpu.memory_space<vmem>>, vector<8x128xf32>
      tpu.vector_store %arg13[%c0_138, %c0_139], %412 {strides = array<i32>} : memref<8x128xf32, #tpu.memory_space<vmem>>, vector<8x128xf32>,
    } else {
    }
    %c0_i32_79 = arith.constant 0 : i32
    %256 = arith.cmpi eq, %252, %c0_i32_79 : i32
    %257 = arith.extui %256 : i1 to i32
    %c0_i32_80 = arith.constant 0 : i32
    %258 = arith.cmpi ne, %257, %c0_i32_80 : i32
    scf.if %258 {
      %cst_136 = arith.constant dense<0xFF800000> : vector<8xf32>
      %412 = vector.multi_reduction <maximumf>, %248, %cst_136 [1] : vector<8x16xf32> to vector<8xf32>
      %413 = vector.shape_cast %412 : vector<8xf32> to vector<8x1xf32>
      %414 = vector.broadcast %413 : vector<8x1xf32> to vector<8x16xf32>
      %415 = arith.cmpf oge, %248, %414 : vector<8x16xf32>
      %c16_i32 = arith.constant 16 : i32
      %416 = vector.broadcast %c16_i32 : i32 to vector<8x16xi32>
      %417 = arith.select %415, %11, %416 : vector<8x16xi1>, vector<8x16xi32>
      %cst_137 = arith.constant dense<2147483647> : vector<8xi32>
      %418 = vector.multi_reduction <minsi>, %417, %cst_137 [1] : vector<8x16xi32> to vector<8xi32>
      %419 = vector.shape_cast %418 : vector<8xi32> to vector<8x1xi32>
      %420 = vector.broadcast %419 : vector<8x1xi32> to vector<8x16xi32>
      %421 = arith.cmpi eq, %11, %420 : vector<8x16xi32>
      %422 = arith.extui %421 : vector<8x16xi1> to vector<8x16xi32>
      %423 = arith.sitofp %422 : vector<8x16xi32> to vector<8x16xf32>
      %424 = arith.truncf %423 : vector<8x16xf32> to vector<8x16xbf16>
      %cst_138 = arith.constant dense<0.000000e+00> : vector<8x128xf32>
      %425 = tpu.matmul %424, %2, %cst_138 {dimension_numbers = #tpu.dot_dimension_numbers<[1], [0], [0], [1], [0, 0, 1, 1], [], []>} : vector<8x16xbf16>, vector<16x128xbf16>, vector<8x128xf32> -> vector<8x128xf32>
      %426 = arith.addf %425, %7 : vector<8x128xf32>
      %c0_139 = arith.constant 0 : index
      %c0_140 = arith.constant 0 : index
      %427 = vector.load %arg13[%c0_139, %c0_140] : memref<8x128xf32, #tpu.memory_space<vmem>>, vector<8x128xf32>
      tpu.vector_store %arg13[%c0_139, %c0_140], %426 {strides = array<i32>} : memref<8x128xf32, #tpu.memory_space<vmem>>, vector<8x128xf32>,
    } else {
    }
    %c0_81 = arith.constant 0 : index
    %c0_82 = arith.constant 0 : index
    %259 = vector.load %arg13[%c0_81, %c0_82] : memref<8x128xf32, #tpu.memory_space<vmem>>, vector<8x128xf32>
    %260 = arith.truncf %245 : vector<8x32xf32> to vector<8x32xbf16>
    %cst_83 = arith.constant dense<0.000000e+00> : vector<8x128xf32>
    %261 = tpu.matmul %260, %1, %cst_83 {dimension_numbers = #tpu.dot_dimension_numbers<[1], [0], [0], [1], [0, 0, 1, 1], [], []>} : vector<8x32xbf16>, vector<32x128xbf16>, vector<8x128xf32> -> vector<8x128xf32>
    %262 = arith.addf %259, %261 : vector<8x128xf32>
    %263 = arith.negf %262 : vector<8x128xf32>
    %264 = math.exp %263 : vector<8x128xf32>
    %cst_84 = arith.constant 1.000000e+00 : f32
    %265 = vector.broadcast %cst_84 : f32 to vector<8x128xf32>
    %266 = arith.addf %265, %264 : vector<8x128xf32>
    %267 = arith.divf %265, %266 : vector<8x128xf32>
    %268 = math.tanh %262 : vector<8x128xf32>
    %269 = vector.extract_strided_slice %267 {offsets = [0, 0], sizes = [8, 32], strides = [1, 1]} : vector<8x128xf32> to vector<8x32xf32>
    %270 = vector.extract_strided_slice %267 {offsets = [0, 32], sizes = [8, 32], strides = [1, 1]} : vector<8x128xf32> to vector<8x32xf32>
    %271 = vector.extract_strided_slice %268 {offsets = [0, 64], sizes = [8, 32], strides = [1, 1]} : vector<8x128xf32> to vector<8x32xf32>
    %272 = vector.extract_strided_slice %267 {offsets = [0, 96], sizes = [8, 32], strides = [1, 1]} : vector<8x128xf32> to vector<8x32xf32>
    %273 = arith.mulf %270, %243 : vector<8x32xf32>
    %274 = arith.mulf %269, %271 : vector<8x32xf32>
    %275 = arith.addf %273, %274 : vector<8x32xf32>
    %276 = math.tanh %275 : vector<8x32xf32>
    %277 = arith.mulf %272, %276 : vector<8x32xf32>
    %278 = arith.truncf %277 : vector<8x32xf32> to vector<8x32xbf16>
    %cst_85 = arith.constant dense<0.000000e+00> : vector<8x16xf32>
    %279 = tpu.matmul %278, %3, %cst_85 {dimension_numbers = #tpu.dot_dimension_numbers<[1], [0], [0], [1], [0, 0, 1, 1], [], []>} : vector<8x32xbf16>, vector<32x16xbf16>, vector<8x16xf32> -> vector<8x16xf32>
    %280 = arith.addf %279, %10 : vector<8x16xf32>
    %c3 = arith.constant 3 : index
    %c0_86 = arith.constant 0 : index
    %c0_87 = arith.constant 0 : index
    %281 = vector.load %arg12[%c3, %c0_86, %c0_87] : memref<8x8x16xf32, #tpu.memory_space<vmem>>, vector<1x8x16xf32>
    %282 = vector.shape_cast %281 : vector<1x8x16xf32> to vector<8x16xf32>
    %283 = vector.shape_cast %280 : vector<8x16xf32> to vector<1x8x16xf32>
    tpu.vector_store %arg12[%c3, %c0_86, %c0_87], %283 {strides = array<i32>} : memref<8x8x16xf32, #tpu.memory_space<vmem>>, vector<1x8x16xf32>,
    %c3_88 = arith.constant 3 : index
    %284 = memref.load %arg0[%c3_88] : memref<8xi32, #tpu.memory_space<smem>>
    %c1_i32_89 = arith.constant 1 : i32
    %285 = arith.cmpi eq, %284, %c1_i32_89 : i32
    %286 = arith.extui %285 : i1 to i32
    %c0_i32_90 = arith.constant 0 : i32
    %287 = arith.cmpi ne, %286, %c0_i32_90 : i32
    scf.if %287 {
      %c24_136 = arith.constant 24 : index
      %c0_137 = arith.constant 0 : index
      %412 = vector.load %arg15[%c24_136, %c0_137] : memref<64x128xf32, #tpu.memory_space<vmem>>, vector<8x128xf32>
      %c0_138 = arith.constant 0 : index
      %c0_139 = arith.constant 0 : index
      %413 = vector.load %arg13[%c0_138, %c0_139] : memref<8x128xf32, #tpu.memory_space<vmem>>, vector<8x128xf32>
      tpu.vector_store %arg13[%c0_138, %c0_139], %412 {strides = array<i32>} : memref<8x128xf32, #tpu.memory_space<vmem>>, vector<8x128xf32>,
    } else {
    }
    %c0_i32_91 = arith.constant 0 : i32
    %288 = arith.cmpi eq, %284, %c0_i32_91 : i32
    %289 = arith.extui %288 : i1 to i32
    %c0_i32_92 = arith.constant 0 : i32
    %290 = arith.cmpi ne, %289, %c0_i32_92 : i32
    scf.if %290 {
      %cst_136 = arith.constant dense<0xFF800000> : vector<8xf32>
      %412 = vector.multi_reduction <maximumf>, %280, %cst_136 [1] : vector<8x16xf32> to vector<8xf32>
      %413 = vector.shape_cast %412 : vector<8xf32> to vector<8x1xf32>
      %414 = vector.broadcast %413 : vector<8x1xf32> to vector<8x16xf32>
      %415 = arith.cmpf oge, %280, %414 : vector<8x16xf32>
      %c16_i32 = arith.constant 16 : i32
      %416 = vector.broadcast %c16_i32 : i32 to vector<8x16xi32>
      %417 = arith.select %415, %11, %416 : vector<8x16xi1>, vector<8x16xi32>
      %cst_137 = arith.constant dense<2147483647> : vector<8xi32>
      %418 = vector.multi_reduction <minsi>, %417, %cst_137 [1] : vector<8x16xi32> to vector<8xi32>
      %419 = vector.shape_cast %418 : vector<8xi32> to vector<8x1xi32>
      %420 = vector.broadcast %419 : vector<8x1xi32> to vector<8x16xi32>
      %421 = arith.cmpi eq, %11, %420 : vector<8x16xi32>
      %422 = arith.extui %421 : vector<8x16xi1> to vector<8x16xi32>
      %423 = arith.sitofp %422 : vector<8x16xi32> to vector<8x16xf32>
      %424 = arith.truncf %423 : vector<8x16xf32> to vector<8x16xbf16>
      %cst_138 = arith.constant dense<0.000000e+00> : vector<8x128xf32>
      %425 = tpu.matmul %424, %2, %cst_138 {dimension_numbers = #tpu.dot_dimension_numbers<[1], [0], [0], [1], [0, 0, 1, 1], [], []>} : vector<8x16xbf16>, vector<16x128xbf16>, vector<8x128xf32> -> vector<8x128xf32>
      %426 = arith.addf %425, %7 : vector<8x128xf32>
      %c0_139 = arith.constant 0 : index
      %c0_140 = arith.constant 0 : index
      %427 = vector.load %arg13[%c0_139, %c0_140] : memref<8x128xf32, #tpu.memory_space<vmem>>, vector<8x128xf32>
      tpu.vector_store %arg13[%c0_139, %c0_140], %426 {strides = array<i32>} : memref<8x128xf32, #tpu.memory_space<vmem>>, vector<8x128xf32>,
    } else {
    }
    %c0_93 = arith.constant 0 : index
    %c0_94 = arith.constant 0 : index
    %291 = vector.load %arg13[%c0_93, %c0_94] : memref<8x128xf32, #tpu.memory_space<vmem>>, vector<8x128xf32>
    %292 = arith.truncf %277 : vector<8x32xf32> to vector<8x32xbf16>
    %cst_95 = arith.constant dense<0.000000e+00> : vector<8x128xf32>
    %293 = tpu.matmul %292, %1, %cst_95 {dimension_numbers = #tpu.dot_dimension_numbers<[1], [0], [0], [1], [0, 0, 1, 1], [], []>} : vector<8x32xbf16>, vector<32x128xbf16>, vector<8x128xf32> -> vector<8x128xf32>
    %294 = arith.addf %291, %293 : vector<8x128xf32>
    %295 = arith.negf %294 : vector<8x128xf32>
    %296 = math.exp %295 : vector<8x128xf32>
    %cst_96 = arith.constant 1.000000e+00 : f32
    %297 = vector.broadcast %cst_96 : f32 to vector<8x128xf32>
    %298 = arith.addf %297, %296 : vector<8x128xf32>
    %299 = arith.divf %297, %298 : vector<8x128xf32>
    %300 = math.tanh %294 : vector<8x128xf32>
    %301 = vector.extract_strided_slice %299 {offsets = [0, 0], sizes = [8, 32], strides = [1, 1]} : vector<8x128xf32> to vector<8x32xf32>
    %302 = vector.extract_strided_slice %299 {offsets = [0, 32], sizes = [8, 32], strides = [1, 1]} : vector<8x128xf32> to vector<8x32xf32>
    %303 = vector.extract_strided_slice %300 {offsets = [0, 64], sizes = [8, 32], strides = [1, 1]} : vector<8x128xf32> to vector<8x32xf32>
    %304 = vector.extract_strided_slice %299 {offsets = [0, 96], sizes = [8, 32], strides = [1, 1]} : vector<8x128xf32> to vector<8x32xf32>
    %305 = arith.mulf %302, %275 : vector<8x32xf32>
    %306 = arith.mulf %301, %303 : vector<8x32xf32>
    %307 = arith.addf %305, %306 : vector<8x32xf32>
    %308 = math.tanh %307 : vector<8x32xf32>
    %309 = arith.mulf %304, %308 : vector<8x32xf32>
    %310 = arith.truncf %309 : vector<8x32xf32> to vector<8x32xbf16>
    %cst_97 = arith.constant dense<0.000000e+00> : vector<8x16xf32>
    %311 = tpu.matmul %310, %3, %cst_97 {dimension_numbers = #tpu.dot_dimension_numbers<[1], [0], [0], [1], [0, 0, 1, 1], [], []>} : vector<8x32xbf16>, vector<32x16xbf16>, vector<8x16xf32> -> vector<8x16xf32>
    %312 = arith.addf %311, %10 : vector<8x16xf32>
    %c4 = arith.constant 4 : index
    %c0_98 = arith.constant 0 : index
    %c0_99 = arith.constant 0 : index
    %313 = vector.load %arg12[%c4, %c0_98, %c0_99] : memref<8x8x16xf32, #tpu.memory_space<vmem>>, vector<1x8x16xf32>
    %314 = vector.shape_cast %313 : vector<1x8x16xf32> to vector<8x16xf32>
    %315 = vector.shape_cast %312 : vector<8x16xf32> to vector<1x8x16xf32>
    tpu.vector_store %arg12[%c4, %c0_98, %c0_99], %315 {strides = array<i32>} : memref<8x8x16xf32, #tpu.memory_space<vmem>>, vector<1x8x16xf32>,
    %c4_100 = arith.constant 4 : index
    %316 = memref.load %arg0[%c4_100] : memref<8xi32, #tpu.memory_space<smem>>
    %c1_i32_101 = arith.constant 1 : i32
    %317 = arith.cmpi eq, %316, %c1_i32_101 : i32
    %318 = arith.extui %317 : i1 to i32
    %c0_i32_102 = arith.constant 0 : i32
    %319 = arith.cmpi ne, %318, %c0_i32_102 : i32
    scf.if %319 {
      %c32_136 = arith.constant 32 : index
      %c0_137 = arith.constant 0 : index
      %412 = vector.load %arg15[%c32_136, %c0_137] : memref<64x128xf32, #tpu.memory_space<vmem>>, vector<8x128xf32>
      %c0_138 = arith.constant 0 : index
      %c0_139 = arith.constant 0 : index
      %413 = vector.load %arg13[%c0_138, %c0_139] : memref<8x128xf32, #tpu.memory_space<vmem>>, vector<8x128xf32>
      tpu.vector_store %arg13[%c0_138, %c0_139], %412 {strides = array<i32>} : memref<8x128xf32, #tpu.memory_space<vmem>>, vector<8x128xf32>,
    } else {
    }
    %c0_i32_103 = arith.constant 0 : i32
    %320 = arith.cmpi eq, %316, %c0_i32_103 : i32
    %321 = arith.extui %320 : i1 to i32
    %c0_i32_104 = arith.constant 0 : i32
    %322 = arith.cmpi ne, %321, %c0_i32_104 : i32
    scf.if %322 {
      %cst_136 = arith.constant dense<0xFF800000> : vector<8xf32>
      %412 = vector.multi_reduction <maximumf>, %312, %cst_136 [1] : vector<8x16xf32> to vector<8xf32>
      %413 = vector.shape_cast %412 : vector<8xf32> to vector<8x1xf32>
      %414 = vector.broadcast %413 : vector<8x1xf32> to vector<8x16xf32>
      %415 = arith.cmpf oge, %312, %414 : vector<8x16xf32>
      %c16_i32 = arith.constant 16 : i32
      %416 = vector.broadcast %c16_i32 : i32 to vector<8x16xi32>
      %417 = arith.select %415, %11, %416 : vector<8x16xi1>, vector<8x16xi32>
      %cst_137 = arith.constant dense<2147483647> : vector<8xi32>
      %418 = vector.multi_reduction <minsi>, %417, %cst_137 [1] : vector<8x16xi32> to vector<8xi32>
      %419 = vector.shape_cast %418 : vector<8xi32> to vector<8x1xi32>
      %420 = vector.broadcast %419 : vector<8x1xi32> to vector<8x16xi32>
      %421 = arith.cmpi eq, %11, %420 : vector<8x16xi32>
      %422 = arith.extui %421 : vector<8x16xi1> to vector<8x16xi32>
      %423 = arith.sitofp %422 : vector<8x16xi32> to vector<8x16xf32>
      %424 = arith.truncf %423 : vector<8x16xf32> to vector<8x16xbf16>
      %cst_138 = arith.constant dense<0.000000e+00> : vector<8x128xf32>
      %425 = tpu.matmul %424, %2, %cst_138 {dimension_numbers = #tpu.dot_dimension_numbers<[1], [0], [0], [1], [0, 0, 1, 1], [], []>} : vector<8x16xbf16>, vector<16x128xbf16>, vector<8x128xf32> -> vector<8x128xf32>
      %426 = arith.addf %425, %7 : vector<8x128xf32>
      %c0_139 = arith.constant 0 : index
      %c0_140 = arith.constant 0 : index
      %427 = vector.load %arg13[%c0_139, %c0_140] : memref<8x128xf32, #tpu.memory_space<vmem>>, vector<8x128xf32>
      tpu.vector_store %arg13[%c0_139, %c0_140], %426 {strides = array<i32>} : memref<8x128xf32, #tpu.memory_space<vmem>>, vector<8x128xf32>,
    } else {
    }
    %c0_105 = arith.constant 0 : index
    %c0_106 = arith.constant 0 : index
    %323 = vector.load %arg13[%c0_105, %c0_106] : memref<8x128xf32, #tpu.memory_space<vmem>>, vector<8x128xf32>
    %324 = arith.truncf %309 : vector<8x32xf32> to vector<8x32xbf16>
    %cst_107 = arith.constant dense<0.000000e+00> : vector<8x128xf32>
    %325 = tpu.matmul %324, %1, %cst_107 {dimension_numbers = #tpu.dot_dimension_numbers<[1], [0], [0], [1], [0, 0, 1, 1], [], []>} : vector<8x32xbf16>, vector<32x128xbf16>, vector<8x128xf32> -> vector<8x128xf32>
    %326 = arith.addf %323, %325 : vector<8x128xf32>
    %327 = arith.negf %326 : vector<8x128xf32>
    %328 = math.exp %327 : vector<8x128xf32>
    %cst_108 = arith.constant 1.000000e+00 : f32
    %329 = vector.broadcast %cst_108 : f32 to vector<8x128xf32>
    %330 = arith.addf %329, %328 : vector<8x128xf32>
    %331 = arith.divf %329, %330 : vector<8x128xf32>
    %332 = math.tanh %326 : vector<8x128xf32>
    %333 = vector.extract_strided_slice %331 {offsets = [0, 0], sizes = [8, 32], strides = [1, 1]} : vector<8x128xf32> to vector<8x32xf32>
    %334 = vector.extract_strided_slice %331 {offsets = [0, 32], sizes = [8, 32], strides = [1, 1]} : vector<8x128xf32> to vector<8x32xf32>
    %335 = vector.extract_strided_slice %332 {offsets = [0, 64], sizes = [8, 32], strides = [1, 1]} : vector<8x128xf32> to vector<8x32xf32>
    %336 = vector.extract_strided_slice %331 {offsets = [0, 96], sizes = [8, 32], strides = [1, 1]} : vector<8x128xf32> to vector<8x32xf32>
    %337 = arith.mulf %334, %307 : vector<8x32xf32>
    %338 = arith.mulf %333, %335 : vector<8x32xf32>
    %339 = arith.addf %337, %338 : vector<8x32xf32>
    %340 = math.tanh %339 : vector<8x32xf32>
    %341 = arith.mulf %336, %340 : vector<8x32xf32>
    %342 = arith.truncf %341 : vector<8x32xf32> to vector<8x32xbf16>
    %cst_109 = arith.constant dense<0.000000e+00> : vector<8x16xf32>
    %343 = tpu.matmul %342, %3, %cst_109 {dimension_numbers = #tpu.dot_dimension_numbers<[1], [0], [0], [1], [0, 0, 1, 1], [], []>} : vector<8x32xbf16>, vector<32x16xbf16>, vector<8x16xf32> -> vector<8x16xf32>
    %344 = arith.addf %343, %10 : vector<8x16xf32>
    %c5 = arith.constant 5 : index
    %c0_110 = arith.constant 0 : index
    %c0_111 = arith.constant 0 : index
    %345 = vector.load %arg12[%c5, %c0_110, %c0_111] : memref<8x8x16xf32, #tpu.memory_space<vmem>>, vector<1x8x16xf32>
    %346 = vector.shape_cast %345 : vector<1x8x16xf32> to vector<8x16xf32>
    %347 = vector.shape_cast %344 : vector<8x16xf32> to vector<1x8x16xf32>
    tpu.vector_store %arg12[%c5, %c0_110, %c0_111], %347 {strides = array<i32>} : memref<8x8x16xf32, #tpu.memory_space<vmem>>, vector<1x8x16xf32>,
    %c5_112 = arith.constant 5 : index
    %348 = memref.load %arg0[%c5_112] : memref<8xi32, #tpu.memory_space<smem>>
    %c1_i32_113 = arith.constant 1 : i32
    %349 = arith.cmpi eq, %348, %c1_i32_113 : i32
    %350 = arith.extui %349 : i1 to i32
    %c0_i32_114 = arith.constant 0 : i32
    %351 = arith.cmpi ne, %350, %c0_i32_114 : i32
    scf.if %351 {
      %c40_136 = arith.constant 40 : index
      %c0_137 = arith.constant 0 : index
      %412 = vector.load %arg15[%c40_136, %c0_137] : memref<64x128xf32, #tpu.memory_space<vmem>>, vector<8x128xf32>
      %c0_138 = arith.constant 0 : index
      %c0_139 = arith.constant 0 : index
      %413 = vector.load %arg13[%c0_138, %c0_139] : memref<8x128xf32, #tpu.memory_space<vmem>>, vector<8x128xf32>
      tpu.vector_store %arg13[%c0_138, %c0_139], %412 {strides = array<i32>} : memref<8x128xf32, #tpu.memory_space<vmem>>, vector<8x128xf32>,
    } else {
    }
    %c0_i32_115 = arith.constant 0 : i32
    %352 = arith.cmpi eq, %348, %c0_i32_115 : i32
    %353 = arith.extui %352 : i1 to i32
    %c0_i32_116 = arith.constant 0 : i32
    %354 = arith.cmpi ne, %353, %c0_i32_116 : i32
    scf.if %354 {
      %cst_136 = arith.constant dense<0xFF800000> : vector<8xf32>
      %412 = vector.multi_reduction <maximumf>, %344, %cst_136 [1] : vector<8x16xf32> to vector<8xf32>
      %413 = vector.shape_cast %412 : vector<8xf32> to vector<8x1xf32>
      %414 = vector.broadcast %413 : vector<8x1xf32> to vector<8x16xf32>
      %415 = arith.cmpf oge, %344, %414 : vector<8x16xf32>
      %c16_i32 = arith.constant 16 : i32
      %416 = vector.broadcast %c16_i32 : i32 to vector<8x16xi32>
      %417 = arith.select %415, %11, %416 : vector<8x16xi1>, vector<8x16xi32>
      %cst_137 = arith.constant dense<2147483647> : vector<8xi32>
      %418 = vector.multi_reduction <minsi>, %417, %cst_137 [1] : vector<8x16xi32> to vector<8xi32>
      %419 = vector.shape_cast %418 : vector<8xi32> to vector<8x1xi32>
      %420 = vector.broadcast %419 : vector<8x1xi32> to vector<8x16xi32>
      %421 = arith.cmpi eq, %11, %420 : vector<8x16xi32>
      %422 = arith.extui %421 : vector<8x16xi1> to vector<8x16xi32>
      %423 = arith.sitofp %422 : vector<8x16xi32> to vector<8x16xf32>
      %424 = arith.truncf %423 : vector<8x16xf32> to vector<8x16xbf16>
      %cst_138 = arith.constant dense<0.000000e+00> : vector<8x128xf32>
      %425 = tpu.matmul %424, %2, %cst_138 {dimension_numbers = #tpu.dot_dimension_numbers<[1], [0], [0], [1], [0, 0, 1, 1], [], []>} : vector<8x16xbf16>, vector<16x128xbf16>, vector<8x128xf32> -> vector<8x128xf32>
      %426 = arith.addf %425, %7 : vector<8x128xf32>
      %c0_139 = arith.constant 0 : index
      %c0_140 = arith.constant 0 : index
      %427 = vector.load %arg13[%c0_139, %c0_140] : memref<8x128xf32, #tpu.memory_space<vmem>>, vector<8x128xf32>
      tpu.vector_store %arg13[%c0_139, %c0_140], %426 {strides = array<i32>} : memref<8x128xf32, #tpu.memory_space<vmem>>, vector<8x128xf32>,
    } else {
    }
    %c0_117 = arith.constant 0 : index
    %c0_118 = arith.constant 0 : index
    %355 = vector.load %arg13[%c0_117, %c0_118] : memref<8x128xf32, #tpu.memory_space<vmem>>, vector<8x128xf32>
    %356 = arith.truncf %341 : vector<8x32xf32> to vector<8x32xbf16>
    %cst_119 = arith.constant dense<0.000000e+00> : vector<8x128xf32>
    %357 = tpu.matmul %356, %1, %cst_119 {dimension_numbers = #tpu.dot_dimension_numbers<[1], [0], [0], [1], [0, 0, 1, 1], [], []>} : vector<8x32xbf16>, vector<32x128xbf16>, vector<8x128xf32> -> vector<8x128xf32>
    %358 = arith.addf %355, %357 : vector<8x128xf32>
    %359 = arith.negf %358 : vector<8x128xf32>
    %360 = math.exp %359 : vector<8x128xf32>
    %cst_120 = arith.constant 1.000000e+00 : f32
    %361 = vector.broadcast %cst_120 : f32 to vector<8x128xf32>
    %362 = arith.addf %361, %360 : vector<8x128xf32>
    %363 = arith.divf %361, %362 : vector<8x128xf32>
    %364 = math.tanh %358 : vector<8x128xf32>
    %365 = vector.extract_strided_slice %363 {offsets = [0, 0], sizes = [8, 32], strides = [1, 1]} : vector<8x128xf32> to vector<8x32xf32>
    %366 = vector.extract_strided_slice %363 {offsets = [0, 32], sizes = [8, 32], strides = [1, 1]} : vector<8x128xf32> to vector<8x32xf32>
    %367 = vector.extract_strided_slice %364 {offsets = [0, 64], sizes = [8, 32], strides = [1, 1]} : vector<8x128xf32> to vector<8x32xf32>
    %368 = vector.extract_strided_slice %363 {offsets = [0, 96], sizes = [8, 32], strides = [1, 1]} : vector<8x128xf32> to vector<8x32xf32>
    %369 = arith.mulf %366, %339 : vector<8x32xf32>
    %370 = arith.mulf %365, %367 : vector<8x32xf32>
    %371 = arith.addf %369, %370 : vector<8x32xf32>
    %372 = math.tanh %371 : vector<8x32xf32>
    %373 = arith.mulf %368, %372 : vector<8x32xf32>
    %374 = arith.truncf %373 : vector<8x32xf32> to vector<8x32xbf16>
    %cst_121 = arith.constant dense<0.000000e+00> : vector<8x16xf32>
    %375 = tpu.matmul %374, %3, %cst_121 {dimension_numbers = #tpu.dot_dimension_numbers<[1], [0], [0], [1], [0, 0, 1, 1], [], []>} : vector<8x32xbf16>, vector<32x16xbf16>, vector<8x16xf32> -> vector<8x16xf32>
    %376 = arith.addf %375, %10 : vector<8x16xf32>
    %c6 = arith.constant 6 : index
    %c0_122 = arith.constant 0 : index
    %c0_123 = arith.constant 0 : index
    %377 = vector.load %arg12[%c6, %c0_122, %c0_123] : memref<8x8x16xf32, #tpu.memory_space<vmem>>, vector<1x8x16xf32>
    %378 = vector.shape_cast %377 : vector<1x8x16xf32> to vector<8x16xf32>
    %379 = vector.shape_cast %376 : vector<8x16xf32> to vector<1x8x16xf32>
    tpu.vector_store %arg12[%c6, %c0_122, %c0_123], %379 {strides = array<i32>} : memref<8x8x16xf32, #tpu.memory_space<vmem>>, vector<1x8x16xf32>,
    %c6_124 = arith.constant 6 : index
    %380 = memref.load %arg0[%c6_124] : memref<8xi32, #tpu.memory_space<smem>>
    %c1_i32_125 = arith.constant 1 : i32
    %381 = arith.cmpi eq, %380, %c1_i32_125 : i32
    %382 = arith.extui %381 : i1 to i32
    %c0_i32_126 = arith.constant 0 : i32
    %383 = arith.cmpi ne, %382, %c0_i32_126 : i32
    scf.if %383 {
      %c48 = arith.constant 48 : index
      %c0_136 = arith.constant 0 : index
      %412 = vector.load %arg15[%c48, %c0_136] : memref<64x128xf32, #tpu.memory_space<vmem>>, vector<8x128xf32>
      %c0_137 = arith.constant 0 : index
      %c0_138 = arith.constant 0 : index
      %413 = vector.load %arg13[%c0_137, %c0_138] : memref<8x128xf32, #tpu.memory_space<vmem>>, vector<8x128xf32>
      tpu.vector_store %arg13[%c0_137, %c0_138], %412 {strides = array<i32>} : memref<8x128xf32, #tpu.memory_space<vmem>>, vector<8x128xf32>,
    } else {
    }
    %c0_i32_127 = arith.constant 0 : i32
    %384 = arith.cmpi eq, %380, %c0_i32_127 : i32
    %385 = arith.extui %384 : i1 to i32
    %c0_i32_128 = arith.constant 0 : i32
    %386 = arith.cmpi ne, %385, %c0_i32_128 : i32
    scf.if %386 {
      %cst_136 = arith.constant dense<0xFF800000> : vector<8xf32>
      %412 = vector.multi_reduction <maximumf>, %376, %cst_136 [1] : vector<8x16xf32> to vector<8xf32>
      %413 = vector.shape_cast %412 : vector<8xf32> to vector<8x1xf32>
      %414 = vector.broadcast %413 : vector<8x1xf32> to vector<8x16xf32>
      %415 = arith.cmpf oge, %376, %414 : vector<8x16xf32>
      %c16_i32 = arith.constant 16 : i32
      %416 = vector.broadcast %c16_i32 : i32 to vector<8x16xi32>
      %417 = arith.select %415, %11, %416 : vector<8x16xi1>, vector<8x16xi32>
      %cst_137 = arith.constant dense<2147483647> : vector<8xi32>
      %418 = vector.multi_reduction <minsi>, %417, %cst_137 [1] : vector<8x16xi32> to vector<8xi32>
      %419 = vector.shape_cast %418 : vector<8xi32> to vector<8x1xi32>
      %420 = vector.broadcast %419 : vector<8x1xi32> to vector<8x16xi32>
      %421 = arith.cmpi eq, %11, %420 : vector<8x16xi32>
      %422 = arith.extui %421 : vector<8x16xi1> to vector<8x16xi32>
      %423 = arith.sitofp %422 : vector<8x16xi32> to vector<8x16xf32>
      %424 = arith.truncf %423 : vector<8x16xf32> to vector<8x16xbf16>
      %cst_138 = arith.constant dense<0.000000e+00> : vector<8x128xf32>
      %425 = tpu.matmul %424, %2, %cst_138 {dimension_numbers = #tpu.dot_dimension_numbers<[1], [0], [0], [1], [0, 0, 1, 1], [], []>} : vector<8x16xbf16>, vector<16x128xbf16>, vector<8x128xf32> -> vector<8x128xf32>
      %426 = arith.addf %425, %7 : vector<8x128xf32>
      %c0_139 = arith.constant 0 : index
      %c0_140 = arith.constant 0 : index
      %427 = vector.load %arg13[%c0_139, %c0_140] : memref<8x128xf32, #tpu.memory_space<vmem>>, vector<8x128xf32>
      tpu.vector_store %arg13[%c0_139, %c0_140], %426 {strides = array<i32>} : memref<8x128xf32, #tpu.memory_space<vmem>>, vector<8x128xf32>,
    } else {
    }
    %c0_129 = arith.constant 0 : index
    %c0_130 = arith.constant 0 : index
    %387 = vector.load %arg13[%c0_129, %c0_130] : memref<8x128xf32, #tpu.memory_space<vmem>>, vector<8x128xf32>
    %388 = arith.truncf %373 : vector<8x32xf32> to vector<8x32xbf16>
    %cst_131 = arith.constant dense<0.000000e+00> : vector<8x128xf32>
    %389 = tpu.matmul %388, %1, %cst_131 {dimension_numbers = #tpu.dot_dimension_numbers<[1], [0], [0], [1], [0, 0, 1, 1], [], []>} : vector<8x32xbf16>, vector<32x128xbf16>, vector<8x128xf32> -> vector<8x128xf32>
    %390 = arith.addf %387, %389 : vector<8x128xf32>
    %391 = arith.negf %390 : vector<8x128xf32>
    %392 = math.exp %391 : vector<8x128xf32>
    %cst_132 = arith.constant 1.000000e+00 : f32
    %393 = vector.broadcast %cst_132 : f32 to vector<8x128xf32>
    %394 = arith.addf %393, %392 : vector<8x128xf32>
    %395 = arith.divf %393, %394 : vector<8x128xf32>
    %396 = math.tanh %390 : vector<8x128xf32>
    %397 = vector.extract_strided_slice %395 {offsets = [0, 0], sizes = [8, 32], strides = [1, 1]} : vector<8x128xf32> to vector<8x32xf32>
    %398 = vector.extract_strided_slice %395 {offsets = [0, 32], sizes = [8, 32], strides = [1, 1]} : vector<8x128xf32> to vector<8x32xf32>
    %399 = vector.extract_strided_slice %396 {offsets = [0, 64], sizes = [8, 32], strides = [1, 1]} : vector<8x128xf32> to vector<8x32xf32>
    %400 = vector.extract_strided_slice %395 {offsets = [0, 96], sizes = [8, 32], strides = [1, 1]} : vector<8x128xf32> to vector<8x32xf32>
    %401 = arith.mulf %398, %371 : vector<8x32xf32>
    %402 = arith.mulf %397, %399 : vector<8x32xf32>
    %403 = arith.addf %401, %402 : vector<8x32xf32>
    %404 = math.tanh %403 : vector<8x32xf32>
    %405 = arith.mulf %400, %404 : vector<8x32xf32>
    %406 = arith.truncf %405 : vector<8x32xf32> to vector<8x32xbf16>
    %cst_133 = arith.constant dense<0.000000e+00> : vector<8x16xf32>
    %407 = tpu.matmul %406, %3, %cst_133 {dimension_numbers = #tpu.dot_dimension_numbers<[1], [0], [0], [1], [0, 0, 1, 1], [], []>} : vector<8x32xbf16>, vector<32x16xbf16>, vector<8x16xf32> -> vector<8x16xf32>
    %408 = arith.addf %407, %10 : vector<8x16xf32>
    %c7 = arith.constant 7 : index
    %c0_134 = arith.constant 0 : index
    %c0_135 = arith.constant 0 : index
    %409 = vector.load %arg12[%c7, %c0_134, %c0_135] : memref<8x8x16xf32, #tpu.memory_space<vmem>>, vector<1x8x16xf32>
    %410 = vector.shape_cast %409 : vector<1x8x16xf32> to vector<8x16xf32>
    %411 = vector.shape_cast %408 : vector<8x16xf32> to vector<1x8x16xf32>
    tpu.vector_store %arg12[%c7, %c0_134, %c0_135], %411 {strides = array<i32>} : memref<8x8x16xf32, #tpu.memory_space<vmem>>, vector<1x8x16xf32>,
    return
  }
}

</mosaic_0001>

<bundles_post_ra>
// kernel: seq2seq_forward.1
= control target key start
LH: loop header
LB: loop body
LE: loop exit
PB: predicated region body
PF: predicated region fallthrough
CT: control target
= control target key end

     0   :  { %17 = vsyncpa [#allocation6], 0  ;;  %s1820_s24 = smov [#allocation5]   ;;  %s2261_s0 = inlined_call_operand.vmem [shape: s32[8], index: 0, kind: input, shape index: {}]   ;;  %s2262_s1 = inlined_call_operand.vmem [shape: s32[8,1], index: 1, kind: input, shape index: {}]   ;;  %s2263_s2 = inlined_call_operand.vmem [shape: bf16[48,32], index: 2, kind: input, shape index: {}]   ;;  %s2264_s3 = inlined_call_operand.vmem [shape: bf16[64,16], index: 3, kind: input, shape index: {}]   ;;  %s2265_s4 = inlined_call_operand.vmem [shape: bf16[32,128], index: 4, kind: input, shape index: {}]   ;;  %s2266_s5 = inlined_call_operand.vmem [shape: bf16[32,128], index: 5, kind: input, shape index: {}]   ;;  %s2267_s6 = inlined_call_operand.vmem [shape: f32[1,128], index: 6, kind: input, shape index: {}]   ;;  %s2268_s7 = inlined_call_operand.vmem [shape: bf16[16,128], index: 7, kind: input, shape index: {}]   ;;  %s2269_s8 = inlined_call_operand.vmem [shape: bf16[32,128], index: 8, kind: input, shape index: {}]   ;;  %s2270_s9 = inlined_call_operand.vmem [shape: f32[1,128], index: 9, kind: input, shape index: {}]   ;;  %s2271_s10 = inlined_call_operand.vmem [shape: bf16[32,16], index: 10, kind: input, shape index: {}]   ;;  %s2272_s11 = inlined_call_operand.vmem [shape: f32[1,16], index: 11, kind: input, shape index: {}]   ;;  %s2273_s12 = inlined_call_operand.vmem [shape: f32[8,8,16], index: 12, kind: output, shape index: {}]  }
   0x1   :  { %s23_s23 = sshll.u32 %s2261_s0, 4  ;;  %s24_s23 = int_to_ptr.vmem [resolvable:$true] %s23_s23 }
   0x2   :  { %26 = dma.vmem_to_smem %s24_s23, 16, %s1820_s24, [#allocation6]  }
   0x3   :  { %1818 = dma.done.wait [#allocation6], 16  }
   0x4   :  { %1819 = vsyncadd [#allocation6], 4294967280 }
   0x5   :  { %53 = sfence }
   0x6   :  { %v1902_v0 = vld [vmem:[%s2270_s9] ss:$0 sm:$0xff]  ;;  %v78_v1 = vlaneseq  ;;  %v1679_v2 = vld [vmem:[%s2265_s4 + $0x8] sm:$0xff]  ;;  %vm121_vm0 = vcmask 261120   ;;  %v1821_v8 = vmov 0   ;;  %v1677_v10 = vld [vmem:[%s2263_s2 + $0x10] sm:$0xff] }
   0x7   :  { %v1910_v3 = vld [vmem:[%s2266_s5 + $0x8] sm:$0xff]  ;;  %137 = vmatpush.bf16.msra.mxu0 %v1679_v2  ;;  %v1678_v5 = vld [vmem:[%s2265_s4] sm:$0xff]  ;;  %1695 = vset.pattern.permute.xlu1 %v1821_v8 }
   0x8   :  { %v1912_v4 = vand.u32 127, %v78_v1  ;;  %250 = vmatpush.bf16.msra.mxu2 %v1910_v3  ;;  %317 = vmatpush.bf16.msra.mxu3 %v1910_v3  ;;  %v1675_v6 = vld [vmem:[%s2263_s2] sm:$0xff]  ;;  %v1676_v9 = vld [vmem:[%s2263_s2 + $0x8] sm:$0xff]  ;;  %s1822_s2 = smov 64  }
   0x9   :  { %v1925_v7 = vld [vmem:[%s2266_s5] sm:$0xff]  ;;  %1696 = vset.pattern.permute.xlu2 %v1821_v8  ;;  %1697 = vset.pattern.permute.xlu0 %v1821_v8 }
   0xa   :  { %v1699_v12 = vld [vmem:[%s2267_s6] ss:$0 sm:$0xff]  ;;  %s1823_s6 = smov 32  }
   0xb   :  { %138 = vmatpush.bf16.msra.mxu0 %v1678_v5  ;;  %v1964_v47 = vld [vmem:[%s2262_s1] sm:$0xff] }
   0xc   :  { %251 = vmatpush.bf16.msra.mxu2 %v1925_v7  ;;  %318 = vmatpush.bf16.msra.mxu3 %v1925_v7  ;;  %vm228_vm5 = vcmp.gt.s32.totalorder %v1964_v47, 0  ;;  %vm295_vm7 = vcmp.gt.s32.totalorder %v1964_v47, 1  ;;  %vm362_vm13 = vcmp.gt.s32.totalorder %v1964_v47, 2 }
   0xd   :  { %v229_v48 = vsel %vm228_vm5, 1, %v1821_v8  ;;  %v296_v62 = vsel %vm295_vm7, 1, %v1821_v8  ;;  %vm496_vm5 = vcmp.gt.s32.totalorder %v1964_v47, 4 }
   0xe   :  { %1548 = vmatmul.msk.bf16.vlgmr.msra.gmra.mxu0 %vm121_vm0, %v1675_v6 }
   0xf   :  { %183 = vmatpush.bf16.msrb.mxu0 %v1910_v3 }
  0x10   :  { %384 = vmatpush.bf16.msrb.mxu2 %v1910_v3  ;;  %518 = vmatpush.bf16.msrb.mxu3 %v1910_v3 }
  0x13   :  { %184 = vmatpush.bf16.msrb.mxu0 %v1925_v7 }
  0x14   :  { %385 = vmatpush.bf16.msrb.mxu2 %v1925_v7  ;;  %519 = vmatpush.bf16.msrb.mxu3 %v1925_v7 }
  0x1e   :  { %1549 = vmatmul.msk.bf16.gmra.mxu0 %vm121_vm0, %v1676_v9 }
  0x2e   :  { %1550 = vmatmul.msk.bf16.gmra.mxu0 %vm121_vm0, %v1677_v10 }
  0x3e   :  { %185 = vmatmul.bf16.vlgmr.msrb.gmra.mxu0 %v1821_v8 }
  0x8b   :  { %v140_v11 = vpop.f32.mrf.mxu0 }
  0x8c   :  { %v141_v23 = vadd.f32 %v1699_v12, %v140_v11 }
  0x93   :  { %v142_v13 = vpop.f32.mrf.mxu0 }
  0x94   :  { %v143_v14 = vadd.f32 %v1699_v12, %v142_v13 }
  0x9b   :  { %v145_v15 = vpop.f32.mrf.mxu0 }
  0x9c   :  { %v1951_v16 = vadd.f32 %v1699_v12, %v145_v15 }
  0xa3   :  { %v147_v17 = vpop.f32.mrf.mxu0 }
  0xa4   :  { %v1953_v18 = vadd.f32 %v1699_v12, %v147_v17 }
  0xab   :  { %v150_v19 = vpop.f32.mrf.mxu0 }
  0xac   :  { %v1955_v20 = vadd.f32 %v1699_v12, %v150_v19 }
  0xb3   :  { %v152_v21 = vpop.f32.mrf.mxu0 }
  0xb4   :  { %v1957_v22 = vadd.f32 %v1699_v12, %v152_v21 }
  0xbb   :  { %v186_v24 = vpop.f32.mrf.mxu0 }
  0xbc   :  { %v190_v25 = vadd.f32 %v186_v24, %v141_v23 }
  0xbe   :  { %1702 = vtanh.f32 %v190_v25  ;;  %v1559_v28 = vmul.f32 -1.442695, %v190_v25 }
  0xc0   :  { %1704 = vpow2.f32 %v1559_v28 }
  0xc3   :  { %v188_v26 = vpop.f32.mrf.mxu0 }
  0xc4   :  { %v1703_v27 = vpop.eup %1702 }
  0xc5   :  { %213 = vrot.lane.b32.xlu0 %v1703_v27, %s1822_s2 }
  0xc6   :  { %v1705_v29 = vpop.eup %1704 }
  0xc7   :  { %v194_v30 = vadd.f32 1.0, %v1705_v29 }
  0xc9   :  { %1706 = vrcp.f32 %v194_v30  ;;  %v206_v36 = vand.u32 2147483648, %v194_v30  ;;  %vm200_vm2 = vweird.f32 %v194_v30  ;;  %v204_v37 = vand.u32 2147483647, %v194_v30 }
  0xcb   :  { %v207_v39 = vor.u32 1.1754944e-38, %v206_v36  ;;  %vm205_vm4 = vcmp.eq.f32.partialorder %v204_v37, 8.507059e+37 }
  0xcf   :  { %v1707_v31 = vpop.eup %1706 }
  0xd0   :  { %v196_v32 = vmul.f32 %v1707_v31, %v194_v30  ;;  %vm201_vm1 = vweird.f32 %v1707_v31 }
  0xd1   :  { %vm202_vm3 = vmor %vm200_vm2, %vm201_vm1 }
  0xd2   :  { %v197_v33 = vsub.f32 1.0, %v196_v32 }
  0xd4   :  { %v198_v34 = vmul.f32 %v1707_v31, %v197_v33  ;;  %v363_v33 = vsel %vm362_vm13, 1, %v1821_v8 }
  0xd6   :  { %v199_v35 = vadd.f32 %v1707_v31, %v198_v34 }
  0xd8   :  { %v203_v38 = vsel %vm202_vm3, %v1707_v31, %v199_v35 }
  0xd9   :  { %v208_v41 = vsel %vm205_vm4, %v207_v39, %v203_v38  ;;  %vm429_vm4 = vcmp.gt.s32.totalorder %v1964_v47, 3 }
  0xda   :  { %v211_v43 = vmul.f32 0.0, %v208_v41 }
 0x137   :  { %v214_v40 = vpop.permute.xlu0 %213 }
 0x138   :  { %v216_v42 = vmul.f32 %v214_v40, %v208_v41 }
 0x13a   :  { %218 = vrot.lane.b32.xlu0 %v216_v42, %s1823_s6 }
 0x1ac   :  { %v219_v44 = vpop.permute.xlu0 %218 }
 0x1ad   :  { %v221_v45 = vadd.f32 %v219_v44, %v211_v43 }
 0x1af   :  { %1708 = vtanh.f32 %v221_v45 }
 0x1b5   :  { %v1709_v46 = vpop.eup %1708 }
 0x1b6   :  { %224 = vrot.lane.b32.xlu1 %v1709_v46, %s1822_s2 }
 0x1be   :  { %231 = vperm.xlu1 %1695, %v229_v48  }
 0x228   :  { %v225_v49 = vpop.permute.xlu1 %224 }
 0x229   :  { %v227_v50 = vmul.f32 %v225_v49, %v208_v41 }
 0x230   :  { %v232_v51 = vpop.permute.xlu1 %231 }
 0x231   :  { %vm233_vm6 = vcmp.eq.s32.totalorder %v232_v51, 1 }
 0x232   :  { %v234_v52 = vsel %vm233_vm6, %v227_v50, 0.0 }
 0x233   :  { %v237_v53 = vpack.c.bf16 %v234_v52, %v234_v52 }
 0x235   :  { %239 = vrot.lane.b32.xlu2 %v237_v53, %s1823_s6 }
 0x28f   :  { %v240_v54 = vpop.permute.xlu2 %239 }
 0x290   :  { %1560 = vmatmul.msk.bf16.vlgmr.msra.gmra.mxu2 %vm121_vm0, %v240_v54 }
 0x291   :  { %451 = vmatpush.bf16.msra.mxu2 %v1910_v3 }
 0x295   :  { %452 = vmatpush.bf16.msra.mxu2 %v1925_v7 }
 0x313   :  { %v253_v55 = vpop.f32.mrf.mxu2 }
 0x314   :  { %v257_v56 = vadd.f32 %v253_v55, %v143_v14  ;;  %v235_v14 = vsel %vm233_vm6, %v221_v45, 0.0 }
 0x316   :  { %1710 = vtanh.f32 %v257_v56  ;;  %v1561_v59 = vmul.f32 -1.442695, %v257_v56 }
 0x318   :  { %1712 = vpow2.f32 %v1561_v59 }
 0x31b   :  { %v255_v57 = vpop.f32.mrf.mxu2 }
 0x31c   :  { %v1711_v58 = vpop.eup %1710 }
 0x31d   :  { %280 = vrot.lane.b32.xlu2 %v1711_v58, %s1822_s2 }
 0x31e   :  { %v1713_v60 = vpop.eup %1712 }
 0x31f   :  { %v261_v61 = vadd.f32 1.0, %v1713_v60 }
 0x321   :  { %1714 = vrcp.f32 %v261_v61  ;;  %v273_v6 = vand.u32 2147483648, %v261_v61  ;;  %vm267_vm9 = vweird.f32 %v261_v61  ;;  %v271_v7 = vand.u32 2147483647, %v261_v61 }
 0x323   :  { %v274_v10 = vor.u32 1.1754944e-38, %v273_v6  ;;  %vm272_vm11 = vcmp.eq.f32.partialorder %v271_v7, 8.507059e+37  ;;  %v497_v6 = vsel %vm496_vm5, 1, %v1821_v8 }
 0x325   :  { %298 = vperm.xlu2 %1696, %v296_v62  }
 0x327   :  { %v1715_v63 = vpop.eup %1714 }
 0x328   :  { %v263_v1 = vmul.f32 %v1715_v63, %v261_v61  ;;  %vm268_vm8 = vweird.f32 %v1715_v63 }
 0x329   :  { %vm269_vm10 = vmor %vm267_vm9, %vm268_vm8 }
 0x32a   :  { %v264_v2 = vsub.f32 1.0, %v263_v1 }
 0x32c   :  { %v265_v3 = vmul.f32 %v1715_v63, %v264_v2 }
 0x32e   :  { %v266_v5 = vadd.f32 %v1715_v63, %v265_v3 }
 0x330   :  { %v270_v9 = vsel %vm269_vm10, %v1715_v63, %v266_v5  ;;  %v430_v5 = vsel %vm429_vm4, 1, %v1821_v8 }
 0x331   :  { %v275_v12 = vsel %vm272_vm11, %v274_v10, %v270_v9 }
 0x332   :  { %v278_v15 = vmul.f32 %v275_v12, %v235_v14 }
 0x377   :  { %v281_v11 = vpop.permute.xlu2 %280 }
 0x378   :  { %v283_v13 = vmul.f32 %v281_v11, %v275_v12 }
 0x37a   :  { %285 = vrot.lane.b32.xlu0 %v283_v13, %s1823_s6 }
 0x37f   :  { %v299_v23 = vpop.permute.xlu2 %298 }
 0x380   :  { %vm300_vm12 = vcmp.eq.s32.totalorder %v299_v23, 1 }
 0x3ec   :  { %v286_v17 = vpop.permute.xlu0 %285 }
 0x3ed   :  { %v288_v19 = vadd.f32 %v286_v17, %v278_v15 }
 0x3ef   :  { %1716 = vtanh.f32 %v288_v19  ;;  %v302_v49 = vsel %vm300_vm12, %v288_v19, %v235_v14 }
 0x3f5   :  { %v1717_v21 = vpop.eup %1716 }
 0x3f6   :  { %291 = vrot.lane.b32.xlu1 %v1717_v21, %s1822_s2 }
 0x468   :  { %v292_v24 = vpop.permute.xlu1 %291 }
 0x469   :  { %v294_v25 = vmul.f32 %v292_v24, %v275_v12 }
 0x46b   :  { %v301_v26 = vsel %vm300_vm12, %v294_v25, %v234_v52 }
 0x46c   :  { %v304_v27 = vpack.c.bf16 %v301_v26, %v301_v26 }
 0x46e   :  { %306 = vrot.lane.b32.xlu0 %v304_v27, %s1823_s6 }
 0x4e0   :  { %v307_v28 = vpop.permute.xlu0 %306 }
 0x4e1   :  { %1562 = vmatmul.msk.bf16.vlgmr.msra.gmra.mxu3 %vm121_vm0, %v307_v28 }
 0x564   :  { %v320_v29 = vpop.f32.mrf.mxu3 }
 0x565   :  { %v324_v30 = vadd.f32 %v320_v29, %v1951_v16 }
 0x567   :  { %1718 = vtanh.f32 %v324_v30  ;;  %v1563_v34 = vmul.f32 -1.442695, %v324_v30 }
 0x569   :  { %1720 = vpow2.f32 %v1563_v34 }
 0x56c   :  { %v322_v31 = vpop.f32.mrf.mxu3 }
 0x56d   :  { %v1719_v32 = vpop.eup %1718 }
 0x56e   :  { %347 = vrot.lane.b32.xlu1 %v1719_v32, %s1822_s2 }
 0x56f   :  { %v1721_v35 = vpop.eup %1720 }
 0x570   :  { %v328_v36 = vadd.f32 1.0, %v1721_v35 }
 0x572   :  { %1722 = vrcp.f32 %v328_v36  ;;  %v340_v41 = vand.u32 2147483648, %v328_v36  ;;  %vm334_vm15 = vweird.f32 %v328_v36  ;;  %v338_v42 = vand.u32 2147483647, %v328_v36 }
 0x574   :  { %v341_v44 = vor.u32 1.1754944e-38, %v340_v41  ;;  %vm339_vm2 = vcmp.eq.f32.partialorder %v338_v42, 8.507059e+37 }
 0x576   :  { %365 = vperm.xlu1 %1695, %v363_v33  }
 0x578   :  { %v1723_v37 = vpop.eup %1722 }
 0x579   :  { %v330_v38 = vmul.f32 %v1723_v37, %v328_v36  ;;  %vm335_vm14 = vweird.f32 %v1723_v37 }
 0x57a   :  { %vm336_vm1 = vmor %vm334_vm15, %vm335_vm14 }
 0x57b   :  { %v331_v39 = vsub.f32 1.0, %v330_v38 }
 0x57d   :  { %v332_v40 = vmul.f32 %v1723_v37, %v331_v39 }
 0x57f   :  { %v333_v16 = vadd.f32 %v1723_v37, %v332_v40 }
 0x581   :  { %v337_v43 = vsel %vm336_vm1, %v1723_v37, %v333_v16  ;;  %vm563_vm1 = vcmp.gt.s32.totalorder %v1964_v47, 5 }
 0x582   :  { %v342_v46 = vsel %vm339_vm2, %v341_v44, %v337_v43 }
 0x583   :  { %v345_v50 = vmul.f32 %v342_v46, %v302_v49 }
 0x5e0   :  { %v348_v45 = vpop.permute.xlu1 %347 }
 0x5e1   :  { %v350_v48 = vmul.f32 %v348_v45, %v342_v46 }
 0x5e3   :  { %352 = vrot.lane.b32.xlu2 %v350_v48, %s1823_s6 }
 0x5e8   :  { %v366_v54 = vpop.permute.xlu1 %365 }
 0x5e9   :  { %vm367_vm3 = vcmp.eq.s32.totalorder %v366_v54, 1 }
 0x63d   :  { %v353_v51 = vpop.permute.xlu2 %352 }
 0x63e   :  { %v355_v52 = vadd.f32 %v353_v51, %v345_v50 }
 0x640   :  { %1724 = vtanh.f32 %v355_v52  ;;  %v369_v23 = vsel %vm367_vm3, %v355_v52, %v302_v49 }
 0x646   :  { %v1725_v53 = vpop.eup %1724 }
 0x647   :  { %358 = vrot.lane.b32.xlu0 %v1725_v53, %s1822_s2 }
 0x6b9   :  { %v359_v55 = vpop.permute.xlu0 %358 }
 0x6ba   :  { %v361_v56 = vmul.f32 %v359_v55, %v342_v46 }
 0x6bc   :  { %v368_v57 = vsel %vm367_vm3, %v361_v56, %v301_v26 }
 0x6bd   :  { %v371_v58 = vpack.c.bf16 %v368_v57, %v368_v57 }
 0x6bf   :  { %373 = vrot.lane.b32.xlu2 %v371_v58, %s1823_s6 }
 0x719   :  { %v374_v59 = vpop.permute.xlu2 %373 }
 0x71a   :  { %1564 = vmatmul.msk.bf16.vlgmr.msrb.gmra.mxu2 %vm121_vm0, %v374_v59 }
 0x79d   :  { %v387_v60 = vpop.f32.mrf.mxu2 }
 0x79e   :  { %v391_v61 = vadd.f32 %v387_v60, %v1953_v18 }
 0x7a0   :  { %1726 = vtanh.f32 %v391_v61  ;;  %v1565_v1 = vmul.f32 -1.442695, %v391_v61 }
 0x7a2   :  { %1728 = vpow2.f32 %v1565_v1 }
 0x7a5   :  { %v389_v62 = vpop.f32.mrf.mxu2 }
 0x7a6   :  { %v1727_v63 = vpop.eup %1726 }
 0x7a7   :  { %414 = vrot.lane.b32.xlu0 %v1727_v63, %s1822_s2 }
 0x7a8   :  { %v1729_v2 = vpop.eup %1728 }
 0x7a9   :  { %v395_v3 = vadd.f32 1.0, %v1729_v2 }
 0x7ab   :  { %1730 = vrcp.f32 %v395_v3  ;;  %v407_v12 = vand.u32 2147483648, %v395_v3  ;;  %vm401_vm7 = vweird.f32 %v395_v3  ;;  %v405_v13 = vand.u32 2147483647, %v395_v3 }
 0x7ad   :  { %v408_v15 = vor.u32 1.1754944e-38, %v407_v12  ;;  %vm406_vm9 = vcmp.eq.f32.partialorder %v405_v13, 8.507059e+37 }
 0x7af   :  { %432 = vperm.xlu0 %1697, %v430_v5   ;;  %v564_v5 = vsel %vm563_vm1, 1, %v1821_v8 }
 0x7b1   :  { %v1731_v18 = vpop.eup %1730 }
 0x7b2   :  { %v397_v7 = vmul.f32 %v1731_v18, %v395_v3  ;;  %vm402_vm6 = vweird.f32 %v1731_v18 }
 0x7b3   :  { %vm403_vm8 = vmor %vm401_vm7, %vm402_vm6  ;;  %vm609_vm6 = vcmask 130048  }
 0x7b4   :  { %v398_v9 = vsub.f32 1.0, %v397_v7 }
 0x7b6   :  { %v399_v10 = vmul.f32 %v1731_v18, %v398_v9 }
 0x7b7   :  { %499 = vperm.xlu0 %1697, %v497_v6  }
 0x7b8   :  { %v400_v11 = vadd.f32 %v1731_v18, %v399_v10 }
 0x7ba   :  { %v404_v14 = vsel %vm403_vm8, %v1731_v18, %v400_v11 }
 0x7bb   :  { %v409_v19 = vsel %vm406_vm9, %v408_v15, %v404_v14 }
 0x7bc   :  { %v412_v24 = vmul.f32 %v409_v19, %v369_v23 }
 0x819   :  { %v415_v17 = vpop.permute.xlu0 %414 }
 0x81a   :  { %v417_v21 = vmul.f32 %v415_v17, %v409_v19 }
 0x81c   :  { %419 = vrot.lane.b32.xlu1 %v417_v21, %s1823_s6 }
 0x821   :  { %v433_v28 = vpop.permute.xlu0 %432 }
 0x822   :  { %vm434_vm10 = vcmp.eq.s32.totalorder %v433_v28, 1  ;;  %v2031_v28 = vld [vmem:[%s2269_s8 + $0x8] sm:$0xff] }
 0x823   :  { %688 = vmatpush.bf16.msrb.mxu2 %v2031_v28 }
 0x88e   :  { %v420_v25 = vpop.permute.xlu1 %419 }
 0x88f   :  { %v422_v26 = vadd.f32 %v420_v25, %v412_v24 }
 0x891   :  { %1732 = vtanh.f32 %v422_v26  ;;  %v436_v52 = vsel %vm434_vm10, %v422_v26, %v369_v23 }
 0x897   :  { %v1733_v27 = vpop.eup %1732 }
 0x898   :  { %425 = vrot.lane.b32.xlu2 %v1733_v27, %s1822_s2  ;;  %v2026_v27 = vld [vmem:[%s2268_s7] sm:$0xff] }
 0x899   :  { %629 = vmatpush.bf16.msra.mxu1 %v2026_v27 }
 0x8f2   :  { %v426_v29 = vpop.permute.xlu2 %425 }
 0x8f3   :  { %v428_v30 = vmul.f32 %v426_v29, %v409_v19  ;;  %v1680_v29 = vld [vmem:[%s2264_s3] sm:$0xff] }
 0x8f4   :  { %1590 = vmatmul.msk.bf16.vlgmr.msra.gmra.mxu1 %vm609_vm6, %v1680_v29 }
 0x8f5   :  { %v435_v31 = vsel %vm434_vm10, %v428_v30, %v368_v57  ;;  %v500_v57 = vpop.permute.xlu0 %499  ;;  %v1824_v30 = vmov 0.0  }
 0x8f6   :  { %v438_v32 = vpack.c.bf16 %v435_v31, %v435_v31  ;;  %vm501_vm15 = vcmp.eq.s32.totalorder %v500_v57, 1  ;;  %659 = vst.msk [vmem:[%s2273_s12] sm:$0xff] %vm609_vm6, %v1824_v30 }
 0x8f8   :  { %440 = vrot.lane.b32.xlu1 %v438_v32, %s1823_s6 }
 0x96a   :  { %v441_v33 = vpop.permute.xlu1 %440 }
 0x96b   :  { %1566 = vmatmul.msk.bf16.vlgmr.msra.gmra.mxu2 %vm121_vm0, %v441_v33 }
 0x9ee   :  { %v454_v34 = vpop.f32.mrf.mxu2 }
 0x9ef   :  { %v458_v35 = vadd.f32 %v454_v34, %v1955_v20 }
 0x9f1   :  { %1734 = vtanh.f32 %v458_v35  ;;  %v1567_v38 = vmul.f32 -1.442695, %v458_v35 }
 0x9f3   :  { %1736 = vpow2.f32 %v1567_v38  ;;  %v631_v38 = vpop.f32.mrf.mxu1 }
 0x9f6   :  { %v456_v36 = vpop.f32.mrf.mxu2 }
 0x9f7   :  { %v1735_v37 = vpop.eup %1734 }
 0x9f8   :  { %481 = vrot.lane.b32.xlu2 %v1735_v37, %s1822_s2  ;;  %v2054_v37 = vld [vmem:[%s2270_s9] ss:$0 sm:$0xff] }
 0x9f9   :  { %v1737_v39 = vpop.eup %1736 }
 0x9fa   :  { %v462_v40 = vadd.f32 1.0, %v1737_v39  ;;  %v632_v39 = vadd.f32 %v2054_v37, %v631_v38 }
 0x9fc   :  { %1738 = vrcp.f32 %v462_v40  ;;  %v474_v45 = vand.u32 2147483648, %v462_v40  ;;  %vm468_vm12 = vweird.f32 %v462_v40  ;;  %v472_v46 = vand.u32 2147483647, %v462_v40  ;;  %661 = vst [vmem:[#allocation2] sm:$0xff] %v632_v39 }
 0x9fe   :  { %v475_v48 = vor.u32 1.1754944e-38, %v474_v45  ;;  %vm473_vm14 = vcmp.eq.f32.partialorder %v472_v46, 8.507059e+37 }
 0xa02   :  { %v1739_v16 = vpop.eup %1738 }
 0xa03   :  { %v464_v41 = vmul.f32 %v1739_v16, %v462_v40  ;;  %vm469_vm11 = vweird.f32 %v1739_v16  ;;  %v633_v40 = vpop.f32.mrf.mxu1 }
 0xa04   :  { %vm470_vm13 = vmor %vm468_vm12, %vm469_vm11 }
 0xa05   :  { %v465_v42 = vsub.f32 1.0, %v464_v41 }
 0xa07   :  { %v466_v43 = vmul.f32 %v1739_v16, %v465_v42 }
 0xa09   :  { %v467_v44 = vadd.f32 %v1739_v16, %v466_v43 }
 0xa0b   :  { %v471_v20 = vsel %vm470_vm13, %v1739_v16, %v467_v44  ;;  %v634_v16 = vadd.f32 %v2054_v37, %v633_v40 }
 0xa0c   :  { %v476_v50 = vsel %vm473_vm14, %v475_v48, %v471_v20 }
 0xa0d   :  { %v479_v53 = vmul.f32 %v476_v50, %v436_v52  ;;  %652 = vst [vmem:[#allocation4] sm:$0xff] %v634_v16 }
 0xa52   :  { %v482_v49 = vpop.permute.xlu2 %481 }
 0xa53   :  { %v484_v51 = vmul.f32 %v482_v49, %v476_v50 }
 0xa55   :  { %486 = vrot.lane.b32.xlu1 %v484_v51, %s1823_s6 }
 0xac7   :  { %v487_v54 = vpop.permute.xlu1 %486 }
 0xac8   :  { %v489_v55 = vadd.f32 %v487_v54, %v479_v53 }
 0xaca   :  { %1740 = vtanh.f32 %v489_v55  ;;  %v2019_v21 = vsel %vm501_vm15, %v489_v55, %v436_v52 }
 0xad0   :  { %v1741_v56 = vpop.eup %1740 }
 0xad1   :  { %492 = vrot.lane.b32.xlu2 %v1741_v56, %s1822_s2 }
 0xb2b   :  { %v493_v58 = vpop.permute.xlu2 %492 }
 0xb2c   :  { %v495_v59 = vmul.f32 %v493_v58, %v476_v50 }
 0xb2e   :  { %v502_v60 = vsel %vm501_vm15, %v495_v59, %v435_v31  ;;  %v2045_v31 = vld [vmem:[%s2269_s8] sm:$0xff] }
 0xb2f   :  { %v505_v61 = vpack.c.bf16 %v502_v60, %v502_v60  ;;  %689 = vmatpush.bf16.msrb.mxu2 %v2045_v31 }
 0xb31   :  { %507 = vrot.lane.b32.xlu1 %v505_v61, %s1823_s6 }
 0xba3   :  { %v508_v62 = vpop.permute.xlu1 %507 }
 0xba4   :  { %1568 = vmatmul.msk.bf16.vlgmr.msrb.gmra.mxu3 %vm121_vm0, %v508_v62 }
 0xc27   :  { %v521_v63 = vpop.f32.mrf.mxu3 }
 0xc28   :  { %v525_v1 = vadd.f32 %v521_v63, %v1957_v22 }
 0xc2a   :  { %1742 = vtanh.f32 %v525_v1  ;;  %v1569_v6 = vmul.f32 -1.442695, %v525_v1 }
 0xc2c   :  { %1744 = vpow2.f32 %v1569_v6  ;;  %v2080_v6 = vld [vmem:[%s2271_s10] sm:$0xff] }
 0xc2f   :  { %v523_v2 = vpop.f32.mrf.mxu3 }
 0xc30   :  { %v1743_v3 = vpop.eup %1742 }
 0xc31   :  { %548 = vrot.lane.b32.xlu2 %v1743_v3, %s1822_s2  ;;  %v1681_v3 = vld [vmem:[%s2264_s3 + $0x8] sm:$0xff] }
 0xc32   :  { %v1745_v18 = vpop.eup %1744  ;;  %1591 = vmatmul.msk.bf16.gmra.mxu1 %vm609_vm6, %v1681_v3 }
 0xc33   :  { %v529_v7 = vadd.f32 1.0, %v1745_v18  ;;  %v1682_v18 = vld [vmem:[%s2264_s3 + $0x10] sm:$0xff] }
 0xc35   :  { %1746 = vrcp.f32 %v529_v7  ;;  %v541_v13 = vand.u32 2147483648, %v529_v7  ;;  %vm535_vm3 = vweird.f32 %v529_v7  ;;  %v539_v14 = vand.u32 2147483647, %v529_v7 }
 0xc37   :  { %v542_v47 = vor.u32 1.1754944e-38, %v541_v13  ;;  %vm540_vm5 = vcmp.eq.f32.partialorder %v539_v14, 8.507059e+37 }
 0xc39   :  { %566 = vperm.xlu2 %1696, %v564_v5   ;;  %v2073_v5 = vld [vmem:[%s2271_s10 + $0x8] sm:$0xff] }
 0xc3a   :  { %758 = vmatpush.bf16.msra.mxu3 %v2073_v5 }
 0xc3b   :  { %v1747_v9 = vpop.eup %1746 }
 0xc3c   :  { %v531_v10 = vmul.f32 %v1747_v9, %v529_v7  ;;  %vm536_vm2 = vweird.f32 %v1747_v9 }
 0xc3d   :  { %vm537_vm4 = vmor %vm535_vm3, %vm536_vm2 }
 0xc3e   :  { %v532_v11 = vsub.f32 1.0, %v531_v10  ;;  %759 = vmatpush.bf16.msra.mxu3 %v2080_v6 }
 0xc40   :  { %v533_v12 = vmul.f32 %v1747_v9, %v532_v11  ;;  %v1683_v11 = vld [vmem:[%s2264_s3 + $0x18] sm:$0xff]  ;;  %s1614_s3 = sld [smem:[#allocation5 + $0x1]] }
 0xc42   :  { %v534_v22 = vadd.f32 %v1747_v9, %v533_v12  ;;  %1592 = vmatmul.msk.bf16.gmra.mxu1 %vm609_vm6, %v1682_v18 }
 0xc44   :  { %v538_v15 = vsel %vm537_vm4, %v1747_v9, %v534_v22 }
 0xc45   :  { %v543_v17 = vsel %vm540_vm5, %v542_v47, %v538_v15 }
 0xc46   :  { %v546_v23 = vmul.f32 %v543_v17, %v2019_v21  ;;  %p1615_p0 = scmp.ne.s32.totalorder %s1614_s3, 1 }
 0xc52   :  { %1593 = vmatmul.msk.bf16.gmra.mxu1 %vm609_vm6, %v1683_v11 }
 0xc8b   :  { %v549_v8 = vpop.permute.xlu2 %548 }
 0xc8c   :  { %v551_v19 = vmul.f32 %v549_v8, %v543_v17 }
 0xc8e   :  { %553 = vrot.lane.b32.xlu0 %v551_v19, %s1823_s6 }
 0xc93   :  { %v567_v32 = vpop.permute.xlu2 %566 }
 0xc94   :  { %vm568_vm7 = vcmp.eq.s32.totalorder %v567_v32, 1 }
 0xcaf   :  { %v636_v12 = vpop.f32.mrf.mxu1 }
 0xcb0   :  { %v637_v22 = vadd.f32 %v2054_v37, %v636_v12 }
 0xcb2   :  { %653 = vst [vmem:[#allocation4 + $0x18] sm:$0xff] %v637_v22 }
 0xcb7   :  { %v638_v13 = vpop.f32.mrf.mxu1 }
 0xcb8   :  { %v639_v14 = vadd.f32 %v2054_v37, %v638_v13 }
 0xcba   :  { %654 = vst [vmem:[#allocation4 + $0x10] sm:$0xff] %v639_v14 }
 0xcbf   :  { %v641_v15 = vpop.f32.mrf.mxu1 }
 0xcc0   :  { %v642_v47 = vadd.f32 %v2054_v37, %v641_v15 }
 0xcc2   :  { %655 = vst [vmem:[#allocation4 + $0x8] sm:$0xff] %v642_v47 }
 0xd00   :  { %v554_v24 = vpop.permute.xlu0 %553 }
 0xd01   :  { %v556_v25 = vadd.f32 %v554_v24, %v546_v23 }
 0xd03   :  { %1748 = vtanh.f32 %v556_v25  ;;  %v570_v61 = vsel %vm568_vm7, %v556_v25, %v2019_v21  ;;  %v2101_v25 = vld [vmem:[%s2272_s11] ss:$0 sm:$0xff] }
 0xd09   :  { %v1749_v26 = vpop.eup %1748 }
 0xd0a   :  { %559 = vrot.lane.b32.xlu1 %v1749_v26, %s1822_s2 }
 0xd7c   :  { %v560_v33 = vpop.permute.xlu1 %559 }
 0xd7d   :  { %v562_v34 = vmul.f32 %v560_v33, %v543_v17  ;;  %v643_v17 = vpop.f32.mrf.mxu1 }
 0xd7e   :  { %v644_v19 = vadd.f32 %v2054_v37, %v643_v17 }
 0xd7f   :  { %v569_v35 = vsel %vm568_vm7, %v562_v34, %v502_v60 }
 0xd80   :  { %v663_v36 = vpack.c.bf16 %v569_v35, %v569_v35  ;;  %656 = vst [vmem:[#allocation4 + $0x20] sm:$0xff] %v644_v19 }
 0xd82   :  { %665 = vrot.lane.b32.xlu0 %v663_v36, %s1823_s6 }
 0xd85   :  { %v646_v21 = vpop.f32.mrf.mxu1 }
 0xd86   :  { %v647_v23 = vadd.f32 %v2054_v37, %v646_v21 }
 0xd88   :  { %657 = vst [vmem:[#allocation4 + $0x28] sm:$0xff] %v647_v23 }
 0xd8d   :  { %v648_v24 = vpop.f32.mrf.mxu1 }
 0xdf4   :  { %v666_v41 = vpop.permute.xlu0 %665 }
 0xdf5   :  { %1602 = vmatmul.msk.bf16.vlgmr.msrb.gmra.mxu2 %vm121_vm0, %v666_v41 }
 0xe78   :  { %v691_v42 = vpop.f32.mrf.mxu2 }
 0xe79   :  { %v695_v43 = vadd.f32 %v691_v42, %v632_v39 }
 0xe7b   :  { %1750 = vtanh.f32 %v695_v43  ;;  %v1603_v46 = vmul.f32 -1.442695, %v695_v43 }
 0xe7d   :  { %1752 = vpow2.f32 %v1603_v46 }
 0xe80   :  { %v693_v44 = vpop.f32.mrf.mxu2 }
 0xe81   :  { %v1751_v45 = vpop.eup %1750 }
 0xe82   :  { %718 = vrot.lane.b32.xlu1 %v1751_v45, %s1822_s2 }
 0xe83   :  { %v1753_v20 = vpop.eup %1752 }
 0xe84   :  { %v699_v48 = vadd.f32 1.0, %v1753_v20 }
 0xe86   :  { %1754 = vrcp.f32 %v699_v48  ;;  %v711_v54 = vand.u32 2147483648, %v699_v48  ;;  %vm705_vm9 = vweird.f32 %v699_v48  ;;  %v709_v55 = vand.u32 2147483647, %v699_v48 }
 0xe88   :  { %v712_v57 = vor.u32 1.1754944e-38, %v711_v54  ;;  %vm710_vm11 = vcmp.eq.f32.partialorder %v709_v55, 8.507059e+37 }
 0xe8c   :  { %v1755_v49 = vpop.eup %1754 }
 0xe8d   :  { %v701_v50 = vmul.f32 %v1755_v49, %v699_v48  ;;  %vm706_vm8 = vweird.f32 %v1755_v49 }
 0xe8e   :  { %vm707_vm10 = vmor %vm705_vm9, %vm706_vm8 }
 0xe8f   :  { %v702_v51 = vsub.f32 1.0, %v701_v50 }
 0xe91   :  { %v703_v52 = vmul.f32 %v1755_v49, %v702_v51 }
 0xe93   :  { %v704_v53 = vadd.f32 %v1755_v49, %v703_v52 }
 0xe95   :  { %v708_v56 = vsel %vm707_vm10, %v1755_v49, %v704_v53 }
 0xe96   :  { %v713_v59 = vsel %vm710_vm11, %v712_v57, %v708_v56 }
 0xe97   :  { %v716_v62 = vmul.f32 %v713_v59, %v570_v61 }
 0xef4   :  { %v719_v58 = vpop.permute.xlu1 %718 }
 0xef5   :  { %v721_v60 = vmul.f32 %v719_v58, %v713_v59 }
 0xef7   :  { %723 = vrot.lane.b32.xlu2 %v721_v60, %s1823_s6 }
 0xf51   :  { %v724_v63 = vpop.permute.xlu2 %723 }
 0xf52   :  { %v2063_v1 = vadd.f32 %v724_v63, %v716_v62 }
 0xf54   :  { %1756 = vtanh.f32 %v2063_v1 }
 0xf5a   :  { %v1757_v2 = vpop.eup %1756 }
 0xf5b   :  { %729 = vrot.lane.b32.xlu0 %v1757_v2, %s1822_s2 }
 0xfcd   :  { %v730_v7 = vpop.permute.xlu0 %729 }
 0xfce   :  { %v732_v9 = vmul.f32 %v730_v7, %v713_v59 }
 0xfd0   :  { %v733_v10 = vpack.c.bf16 %v732_v9, %v732_v9 }
 0xfd2   :  { %735 = vrot.lane.b32.xlu1 %v733_v10, %s1823_s6 }
0x1044   :  { %v736_v8 = vpop.permute.xlu1 %735 }
0x1045   :  { %1612 = vmatmul.msk.bf16.vlgmr.msra.gmra.mxu3 %vm121_vm0, %v736_v8 }
0x10c8   :  { %v761_v26 = vpop.f32.mrf.mxu3 }
0x10c9   :  { %v762_v29 = vadd.f32 %v2101_v25, %v761_v26 }
0x10cb   :  { %1613 = vst.msk [vmem:[%s2273_s12 + $0x8] sm:$0xff] %vm609_vm6, %v762_v29 }
0x10cc   :  { %771 = sbr.rel (%p1615_p0) target bundleno = 4307 (0x10d3), region = 57 }
0x10d0   :  { %v763_v30 = vpop.f32.mrf.mxu3 }
0x10d1   :  { %v772_v32 = vld [vmem:[#allocation4] sm:$0xff] }
0x10d2   :  { %773 = vst [vmem:[#allocation2] sm:$0xff] %v772_v32 }
0x10d3 PF:  { %p1616_p1 = scmp.ne.s32.totalorder %s1614_s3, 0 }
0x10d5   :  { %777 = sbr.rel (%p1616_p1) target bundleno = 4814 (0x12ce), region = 61 }
0x10da   :  { %v778_v33 = vsel %vm609_vm6, %v762_v29, -inf  ;;  %812 = vmatpush.bf16.msra.mxu0 %v2026_v27  ;;  %v1825_v20 = vmov 0.0  }
0x10db   :  { %779 = vmax.xlane.f32.xlu0 %v778_v33 }
0x114e   :  { %v780_v34 = vpop.xlane.xlu0 %779 }
0x114f   :  { %vm781_vm12 = vcmp.ge.f32.partialorder %v762_v29, %v780_v34 }
0x1150   :  { %v782_v35 = vsel %vm781_vm12, %v1912_v4, 16 }
0x1151   :  { %v783_v36 = vsel %vm609_vm6, %v782_v35, 2147483647 }
0x1152   :  { %v785_v37 = vshra.s32 %v783_v36, 16  ;;  %v784_v39 = vand.u32 65535, %v783_v36 }
0x1154   :  { %v787_v38 = vcvt.s32.f32 %v785_v37  ;;  %v786_v16 = vcvt.s32.f32 %v784_v39 }
0x1156   :  { %788 = vmin.xlane.f32.xlu0 %v787_v38 }
0x11c9   :  { %v789_v40 = vpop.xlane.xlu0 %788 }
0x11ca   :  { %vm790_vm13 = vcmp.eq.f32.partialorder %v787_v38, %v789_v40  ;;  %v795_v42 = vcvt.f32.s32 %v789_v40 }
0x11cb   :  { %v791_v41 = vsel %vm790_vm13, %v786_v16, inf }
0x11cc   :  { %792 = vmin.xlane.f32.xlu1 %v791_v41  ;;  %v796_v44 = vshll.u32 %v795_v42, 16 }
0x123f   :  { %v793_v43 = vpop.xlane.xlu1 %792 }
0x1240   :  { %v794_v45 = vcvt.f32.s32 %v793_v43 }
0x1242   :  { %v797_v46 = vadd.s32 %v796_v44, %v794_v45 }
0x1244   :  { %vm798_vm14 = vcmp.eq.s32.totalorder %v1912_v4, %v797_v46 }
0x1245   :  { %v1617_v48 = vsel %vm798_vm14, 1.0, %v1825_v20 }
0x1246   :  { %v801_v49 = vpack.c.bf16 %v1617_v48, %v1617_v48 }
0x1248   :  { %1618 = vmatmul.msk.bf16.vlgmr.msra.gmra.mxu0 %vm609_vm6, %v801_v49 }
0x12c5   :  { %v814_v50 = vpop.f32.mrf.mxu0 }
0x12c6   :  { %v815_v51 = vadd.f32 %v1902_v0, %v814_v50 }
0x12c8   :  { %818 = vst [vmem:[#allocation2] sm:$0xff] %v815_v51 }
0x12cd   :  { %v816_v52 = vpop.f32.mrf.mxu0 }
0x12ce PF:  { %826 = vmatpush.bf16.msra.mxu0 %v2031_v28  ;;  %884 = vmatpush.bf16.msra.mxu1 %v2073_v5  ;;  %s1623_s11 = sld [smem:[#allocation5 + $0x2]] }
0x12cf   :  { %v819_v53 = vld [vmem:[#allocation2] sm:$0xff] }
0x12d2   :  { %827 = vmatpush.bf16.msra.mxu0 %v2045_v31  ;;  %885 = vmatpush.bf16.msra.mxu1 %v2080_v6 }
0x12d4   :  { %p1624_p2 = scmp.ne.s32.totalorder %s1623_s11, 1 }
0x12d5   :  { %1619 = vmatmul.msk.bf16.vlgmr.msra.gmra.mxu0 %vm121_vm0, %v736_v8 }
0x1352   :  { %v829_v54 = vpop.f32.mrf.mxu0 }
0x1353   :  { %v833_v55 = vadd.f32 %v829_v54, %v819_v53 }
0x1355   :  { %1758 = vtanh.f32 %v833_v55  ;;  %v1620_v58 = vmul.f32 -1.442695, %v833_v55 }
0x1357   :  { %1760 = vpow2.f32 %v1620_v58 }
0x135a   :  { %v831_v56 = vpop.f32.mrf.mxu0 }
0x135b   :  { %v1759_v57 = vpop.eup %1758 }
0x135c   :  { %856 = vrot.lane.b32.xlu0 %v1759_v57, %s1822_s2 }
0x135d   :  { %v1761_v59 = vpop.eup %1760 }
0x135e   :  { %v837_v60 = vadd.f32 1.0, %v1761_v59 }
0x1360   :  { %1762 = vrcp.f32 %v837_v60  ;;  %v849_v18 = vand.u32 2147483648, %v837_v60  ;;  %vm843_vm1 = vweird.f32 %v837_v60  ;;  %v847_v7 = vand.u32 2147483647, %v837_v60 }
0x1362   :  { %v850_v10 = vor.u32 1.1754944e-38, %v849_v18  ;;  %vm848_vm3 = vcmp.eq.f32.partialorder %v847_v7, 8.507059e+37 }
0x1366   :  { %v1763_v61 = vpop.eup %1762 }
0x1367   :  { %v839_v62 = vmul.f32 %v1763_v61, %v837_v60  ;;  %vm844_vm15 = vweird.f32 %v1763_v61 }
0x1368   :  { %vm845_vm2 = vmor %vm843_vm1, %vm844_vm15 }
0x1369   :  { %v840_v63 = vsub.f32 1.0, %v839_v62 }
0x136b   :  { %v841_v2 = vmul.f32 %v1763_v61, %v840_v63 }
0x136d   :  { %v842_v3 = vadd.f32 %v1763_v61, %v841_v2 }
0x136f   :  { %v846_v9 = vsel %vm845_vm2, %v1763_v61, %v842_v3 }
0x1370   :  { %v851_v12 = vsel %vm848_vm3, %v850_v10, %v846_v9 }
0x1371   :  { %v854_v13 = vmul.f32 %v851_v12, %v2063_v1 }
0x13ce   :  { %v857_v11 = vpop.permute.xlu0 %856 }
0x13cf   :  { %v859_v22 = vmul.f32 %v857_v11, %v851_v12 }
0x13d1   :  { %861 = vrot.lane.b32.xlu0 %v859_v22, %s1823_s6 }
0x1443   :  { %v862_v14 = vpop.permute.xlu0 %861 }
0x1444   :  { %v2123_v15 = vadd.f32 %v862_v14, %v854_v13 }
0x1446   :  { %1764 = vtanh.f32 %v2123_v15 }
0x144c   :  { %v1765_v47 = vpop.eup %1764 }
0x144d   :  { %867 = vrot.lane.b32.xlu1 %v1765_v47, %s1822_s2 }
0x14bf   :  { %v868_v8 = vpop.permute.xlu1 %867 }
0x14c0   :  { %v870_v17 = vmul.f32 %v868_v8, %v851_v12 }
0x14c2   :  { %v871_v19 = vpack.c.bf16 %v870_v17, %v870_v17 }
0x14c4   :  { %873 = vrot.lane.b32.xlu1 %v871_v19, %s1823_s6 }
0x1536   :  { %v874_v21 = vpop.permute.xlu1 %873 }
0x1537   :  { %1621 = vmatmul.msk.bf16.vlgmr.msra.gmra.mxu1 %vm121_vm0, %v874_v21 }
0x15b4   :  { %v887_v23 = vpop.f32.mrf.mxu1 }
0x15b5   :  { %v888_v1 = vadd.f32 %v2101_v25, %v887_v23 }
0x15b7   :  { %1622 = vst.msk [vmem:[%s2273_s12 + $0x10] sm:$0xff] %vm609_vm6, %v888_v1 }
0x15b8   :  { %897 = sbr.rel (%p1624_p2) target bundleno = 5567 (0x15bf), region = 65 }
0x15bc   :  { %v889_v24 = vpop.f32.mrf.mxu1 }
0x15bd   :  { %v898_v26 = vld [vmem:[#allocation4 + $0x18] sm:$0xff] }
0x15be   :  { %899 = vst [vmem:[#allocation2] sm:$0xff] %v898_v26 }
0x15bf PF:  { %p1625_p3 = scmp.ne.s32.totalorder %s1623_s11, 0 }
0x15c1   :  { %903 = sbr.rel (%p1625_p3) target bundleno = 6074 (0x17ba), region = 69 }
0x15c6   :  { %v904_v29 = vsel %vm609_vm6, %v888_v1, -inf  ;;  %938 = vmatpush.bf16.msra.mxu0 %v2026_v27  ;;  %v1826_v44 = vmov 0.0  }
0x15c7   :  { %905 = vmax.xlane.f32.xlu0 %v904_v29 }
0x163a   :  { %v906_v30 = vpop.xlane.xlu0 %905 }
0x163b   :  { %vm907_vm4 = vcmp.ge.f32.partialorder %v888_v1, %v906_v30 }
0x163c   :  { %v908_v32 = vsel %vm907_vm4, %v1912_v4, 16 }
0x163d   :  { %v909_v33 = vsel %vm609_vm6, %v908_v32, 2147483647 }
0x163e   :  { %v911_v34 = vshra.s32 %v909_v33, 16  ;;  %v910_v36 = vand.u32 65535, %v909_v33 }
0x1640   :  { %v913_v35 = vcvt.s32.f32 %v911_v34  ;;  %v912_v38 = vcvt.s32.f32 %v910_v36 }
0x1642   :  { %914 = vmin.xlane.f32.xlu0 %v913_v35 }
0x16b5   :  { %v915_v37 = vpop.xlane.xlu0 %914 }
0x16b6   :  { %vm916_vm5 = vcmp.eq.f32.partialorder %v913_v35, %v915_v37  ;;  %v921_v40 = vcvt.f32.s32 %v915_v37 }
0x16b7   :  { %v917_v39 = vsel %vm916_vm5, %v912_v38, inf }
0x16b8   :  { %918 = vmin.xlane.f32.xlu1 %v917_v39  ;;  %v922_v41 = vshll.u32 %v921_v40, 16 }
0x172b   :  { %v919_v16 = vpop.xlane.xlu1 %918 }
0x172c   :  { %v920_v42 = vcvt.f32.s32 %v919_v16 }
0x172e   :  { %v923_v43 = vadd.s32 %v922_v41, %v920_v42 }
0x1730   :  { %vm924_vm7 = vcmp.eq.s32.totalorder %v1912_v4, %v923_v43 }
0x1731   :  { %v1626_v45 = vsel %vm924_vm7, 1.0, %v1826_v44 }
0x1732   :  { %v927_v46 = vpack.c.bf16 %v1626_v45, %v1626_v45 }
0x1734   :  { %1627 = vmatmul.msk.bf16.vlgmr.msra.gmra.mxu0 %vm609_vm6, %v927_v46 }
0x17b1   :  { %v940_v20 = vpop.f32.mrf.mxu0 }
0x17b2   :  { %v941_v48 = vadd.f32 %v1902_v0, %v940_v20 }
0x17b4   :  { %944 = vst [vmem:[#allocation2] sm:$0xff] %v941_v48 }
0x17b9   :  { %v942_v49 = vpop.f32.mrf.mxu0 }
0x17ba PF:  { %952 = vmatpush.bf16.msra.mxu0 %v2031_v28  ;;  %1010 = vmatpush.bf16.msra.mxu1 %v2073_v5  ;;  %s1632_s25 = sld [smem:[#allocation5 + $0x3]] }
0x17bb   :  { %v945_v50 = vld [vmem:[#allocation2] sm:$0xff] }
0x17be   :  { %953 = vmatpush.bf16.msra.mxu0 %v2045_v31  ;;  %1011 = vmatpush.bf16.msra.mxu1 %v2080_v6 }
0x17c0   :  { %p1633_p4 = scmp.ne.s32.totalorder %s1632_s25, 1 }
0x17c1   :  { %1628 = vmatmul.msk.bf16.vlgmr.msra.gmra.mxu0 %vm121_vm0, %v874_v21 }
0x183e   :  { %v955_v51 = vpop.f32.mrf.mxu0 }
0x183f   :  { %v959_v52 = vadd.f32 %v955_v51, %v945_v50 }
0x1841   :  { %1766 = vtanh.f32 %v959_v52  ;;  %v1629_v55 = vmul.f32 -1.442695, %v959_v52 }
0x1843   :  { %1768 = vpow2.f32 %v1629_v55 }
0x1846   :  { %v957_v53 = vpop.f32.mrf.mxu0 }
0x1847   :  { %v1767_v54 = vpop.eup %1766 }
0x1848   :  { %982 = vrot.lane.b32.xlu0 %v1767_v54, %s1822_s2 }
0x1849   :  { %v1769_v56 = vpop.eup %1768 }
0x184a   :  { %v963_v57 = vadd.f32 1.0, %v1769_v56 }
0x184c   :  { %1770 = vrcp.f32 %v963_v57  ;;  %v975_v63 = vand.u32 2147483648, %v963_v57  ;;  %vm969_vm9 = vweird.f32 %v963_v57  ;;  %v973_v2 = vand.u32 2147483647, %v963_v57 }
0x184e   :  { %v976_v18 = vor.u32 1.1754944e-38, %v975_v63  ;;  %vm974_vm11 = vcmp.eq.f32.partialorder %v973_v2, 8.507059e+37 }
0x1852   :  { %v1771_v58 = vpop.eup %1770 }
0x1853   :  { %v965_v59 = vmul.f32 %v1771_v58, %v963_v57  ;;  %vm970_vm8 = vweird.f32 %v1771_v58 }
0x1854   :  { %vm971_vm10 = vmor %vm969_vm9, %vm970_vm8 }
0x1855   :  { %v966_v60 = vsub.f32 1.0, %v965_v59 }
0x1857   :  { %v967_v61 = vmul.f32 %v1771_v58, %v966_v60 }
0x1859   :  { %v968_v62 = vadd.f32 %v1771_v58, %v967_v61 }
0x185b   :  { %v972_v3 = vsel %vm971_vm10, %v1771_v58, %v968_v62 }
0x185c   :  { %v977_v9 = vsel %vm974_vm11, %v976_v18, %v972_v3 }
0x185d   :  { %v980_v11 = vmul.f32 %v977_v9, %v2123_v15 }
0x18ba   :  { %v983_v7 = vpop.permute.xlu0 %982 }
0x18bb   :  { %v985_v10 = vmul.f32 %v983_v7, %v977_v9 }
0x18bd   :  { %987 = vrot.lane.b32.xlu0 %v985_v10, %s1823_s6 }
0x192f   :  { %v988_v12 = vpop.permute.xlu0 %987 }
0x1930   :  { %v2149_v22 = vadd.f32 %v988_v12, %v980_v11 }
0x1932   :  { %1772 = vtanh.f32 %v2149_v22 }
0x1938   :  { %v1773_v13 = vpop.eup %1772 }
0x1939   :  { %993 = vrot.lane.b32.xlu1 %v1773_v13, %s1822_s2 }
0x19ab   :  { %v994_v14 = vpop.permute.xlu1 %993 }
0x19ac   :  { %v996_v47 = vmul.f32 %v994_v14, %v977_v9 }
0x19ae   :  { %v997_v8 = vpack.c.bf16 %v996_v47, %v996_v47 }
0x19b0   :  { %999 = vrot.lane.b32.xlu1 %v997_v8, %s1823_s6 }
0x1a22   :  { %v1000_v17 = vpop.permute.xlu1 %999 }
0x1a23   :  { %1630 = vmatmul.msk.bf16.vlgmr.msra.gmra.mxu1 %vm121_vm0, %v1000_v17 }
0x1aa0   :  { %v1013_v19 = vpop.f32.mrf.mxu1 }
0x1aa1   :  { %v1014_v15 = vadd.f32 %v2101_v25, %v1013_v19 }
0x1aa3   :  { %1631 = vst.msk [vmem:[%s2273_s12 + $0x18] sm:$0xff] %vm609_vm6, %v1014_v15 }
0x1aa4   :  { %1023 = sbr.rel (%p1633_p4) target bundleno = 6827 (0x1aab), region = 73 }
0x1aa8   :  { %v1015_v21 = vpop.f32.mrf.mxu1 }
0x1aa9   :  { %v1024_v23 = vld [vmem:[#allocation4 + $0x10] sm:$0xff] }
0x1aaa   :  { %1025 = vst [vmem:[#allocation2] sm:$0xff] %v1024_v23 }
0x1aab PF:  { %p1634_p5 = scmp.ne.s32.totalorder %s1632_s25, 0 }
0x1aad   :  { %1029 = sbr.rel (%p1634_p5) target bundleno = 7334 (0x1ca6), region = 77 }
0x1ab2   :  { %v1030_v1 = vsel %vm609_vm6, %v1014_v15, -inf  ;;  %1064 = vmatpush.bf16.msra.mxu0 %v2026_v27  ;;  %v1827_v41 = vmov 0.0  }
0x1ab3   :  { %1031 = vmax.xlane.f32.xlu0 %v1030_v1 }
0x1b26   :  { %v1032_v24 = vpop.xlane.xlu0 %1031 }
0x1b27   :  { %vm1033_vm12 = vcmp.ge.f32.partialorder %v1014_v15, %v1032_v24 }
0x1b28   :  { %v1034_v26 = vsel %vm1033_vm12, %v1912_v4, 16 }
0x1b29   :  { %v1035_v29 = vsel %vm609_vm6, %v1034_v26, 2147483647 }
0x1b2a   :  { %v1037_v30 = vshra.s32 %v1035_v29, 16  ;;  %v1036_v33 = vand.u32 65535, %v1035_v29 }
0x1b2c   :  { %v1039_v32 = vcvt.s32.f32 %v1037_v30  ;;  %v1038_v35 = vcvt.s32.f32 %v1036_v33 }
0x1b2e   :  { %1040 = vmin.xlane.f32.xlu0 %v1039_v32 }
0x1ba1   :  { %v1041_v34 = vpop.xlane.xlu0 %1040 }
0x1ba2   :  { %vm1042_vm13 = vcmp.eq.f32.partialorder %v1039_v32, %v1041_v34  ;;  %v1047_v37 = vcvt.f32.s32 %v1041_v34 }
0x1ba3   :  { %v1043_v36 = vsel %vm1042_vm13, %v1038_v35, inf }
0x1ba4   :  { %1044 = vmin.xlane.f32.xlu1 %v1043_v36  ;;  %v1048_v39 = vshll.u32 %v1047_v37, 16 }
0x1c17   :  { %v1045_v38 = vpop.xlane.xlu1 %1044 }
0x1c18   :  { %v1046_v40 = vcvt.f32.s32 %v1045_v38 }
0x1c1a   :  { %v1049_v16 = vadd.s32 %v1048_v39, %v1046_v40 }
0x1c1c   :  { %vm1050_vm14 = vcmp.eq.s32.totalorder %v1912_v4, %v1049_v16 }
0x1c1d   :  { %v1635_v42 = vsel %vm1050_vm14, 1.0, %v1827_v41 }
0x1c1e   :  { %v1053_v43 = vpack.c.bf16 %v1635_v42, %v1635_v42 }
0x1c20   :  { %1636 = vmatmul.msk.bf16.vlgmr.msra.gmra.mxu0 %vm609_vm6, %v1053_v43 }
0x1c9d   :  { %v1066_v44 = vpop.f32.mrf.mxu0 }
0x1c9e   :  { %v1067_v45 = vadd.f32 %v1902_v0, %v1066_v44 }
0x1ca0   :  { %1070 = vst [vmem:[#allocation2] sm:$0xff] %v1067_v45 }
0x1ca5   :  { %v1068_v46 = vpop.f32.mrf.mxu0 }
0x1ca6 PF:  { %1078 = vmatpush.bf16.msra.mxu0 %v2031_v28  ;;  %1136 = vmatpush.bf16.msra.mxu1 %v2073_v5  ;;  %s1641_s28 = sld [smem:[#allocation5 + $0x4]] }
0x1ca7   :  { %v1071_v20 = vld [vmem:[#allocation2] sm:$0xff] }
0x1caa   :  { %1079 = vmatpush.bf16.msra.mxu0 %v2045_v31  ;;  %1137 = vmatpush.bf16.msra.mxu1 %v2080_v6 }
0x1cac   :  { %p1642_p6 = scmp.ne.s32.totalorder %s1641_s28, 1 }
0x1cad   :  { %1637 = vmatmul.msk.bf16.vlgmr.msra.gmra.mxu0 %vm121_vm0, %v1000_v17 }
0x1d2a   :  { %v1081_v48 = vpop.f32.mrf.mxu0 }
0x1d2b   :  { %v1085_v49 = vadd.f32 %v1081_v48, %v1071_v20 }
0x1d2d   :  { %1774 = vtanh.f32 %v1085_v49  ;;  %v1638_v52 = vmul.f32 -1.442695, %v1085_v49 }
0x1d2f   :  { %1776 = vpow2.f32 %v1638_v52 }
0x1d32   :  { %v1083_v50 = vpop.f32.mrf.mxu0 }
0x1d33   :  { %v1775_v51 = vpop.eup %1774 }
0x1d34   :  { %1108 = vrot.lane.b32.xlu0 %v1775_v51, %s1822_s2 }
0x1d35   :  { %v1777_v53 = vpop.eup %1776 }
0x1d36   :  { %v1089_v54 = vadd.f32 1.0, %v1777_v53 }
0x1d38   :  { %1778 = vrcp.f32 %v1089_v54  ;;  %v1101_v60 = vand.u32 2147483648, %v1089_v54  ;;  %vm1095_vm1 = vweird.f32 %v1089_v54  ;;  %v1099_v61 = vand.u32 2147483647, %v1089_v54 }
0x1d3a   :  { %v1102_v63 = vor.u32 1.1754944e-38, %v1101_v60  ;;  %vm1100_vm3 = vcmp.eq.f32.partialorder %v1099_v61, 8.507059e+37 }
0x1d3e   :  { %v1779_v55 = vpop.eup %1778 }
0x1d3f   :  { %v1091_v56 = vmul.f32 %v1779_v55, %v1089_v54  ;;  %vm1096_vm15 = vweird.f32 %v1779_v55 }
0x1d40   :  { %vm1097_vm2 = vmor %vm1095_vm1, %vm1096_vm15 }
0x1d41   :  { %v1092_v57 = vsub.f32 1.0, %v1091_v56 }
0x1d43   :  { %v1093_v58 = vmul.f32 %v1779_v55, %v1092_v57 }
0x1d45   :  { %v1094_v59 = vadd.f32 %v1779_v55, %v1093_v58 }
0x1d47   :  { %v1098_v62 = vsel %vm1097_vm2, %v1779_v55, %v1094_v59 }
0x1d48   :  { %v1103_v3 = vsel %vm1100_vm3, %v1102_v63, %v1098_v62 }
0x1d49   :  { %v1106_v7 = vmul.f32 %v1103_v3, %v2149_v22 }
0x1da6   :  { %v1109_v2 = vpop.permute.xlu0 %1108 }
0x1da7   :  { %v1111_v18 = vmul.f32 %v1109_v2, %v1103_v3 }
0x1da9   :  { %1113 = vrot.lane.b32.xlu0 %v1111_v18, %s1823_s6 }
0x1e1b   :  { %v1114_v9 = vpop.permute.xlu0 %1113 }
0x1e1c   :  { %v2175_v10 = vadd.f32 %v1114_v9, %v1106_v7 }
0x1e1e   :  { %1780 = vtanh.f32 %v2175_v10 }
0x1e24   :  { %v1781_v11 = vpop.eup %1780 }
0x1e25   :  { %1119 = vrot.lane.b32.xlu1 %v1781_v11, %s1822_s2 }
0x1e97   :  { %v1120_v12 = vpop.permute.xlu1 %1119 }
0x1e98   :  { %v1122_v13 = vmul.f32 %v1120_v12, %v1103_v3 }
0x1e9a   :  { %v1123_v14 = vpack.c.bf16 %v1122_v13, %v1122_v13 }
0x1e9c   :  { %1125 = vrot.lane.b32.xlu1 %v1123_v14, %s1823_s6 }
0x1f0e   :  { %v1126_v47 = vpop.permute.xlu1 %1125 }
0x1f0f   :  { %1639 = vmatmul.msk.bf16.vlgmr.msra.gmra.mxu1 %vm121_vm0, %v1126_v47 }
0x1f8c   :  { %v1139_v8 = vpop.f32.mrf.mxu1 }
0x1f8d   :  { %v1140_v22 = vadd.f32 %v2101_v25, %v1139_v8 }
0x1f8f   :  { %1640 = vst.msk [vmem:[%s2273_s12 + $0x20] sm:$0xff] %vm609_vm6, %v1140_v22 }
0x1f90   :  { %1149 = sbr.rel (%p1642_p6) target bundleno = 8087 (0x1f97), region = 81 }
0x1f94   :  { %v1141_v17 = vpop.f32.mrf.mxu1 }
0x1f95   :  { %v1150_v19 = vld [vmem:[#allocation4 + $0x8] sm:$0xff] }
0x1f96   :  { %1151 = vst [vmem:[#allocation2] sm:$0xff] %v1150_v19 }
0x1f97 PF:  { %p1643_p7 = scmp.ne.s32.totalorder %s1641_s28, 0 }
0x1f99   :  { %1155 = sbr.rel (%p1643_p7) target bundleno = 8594 (0x2192), region = 85 }
0x1f9e   :  { %v1156_v15 = vsel %vm609_vm6, %v1140_v22, -inf  ;;  %1190 = vmatpush.bf16.msra.mxu0 %v2026_v27  ;;  %v1828_v39 = vmov 0.0  }
0x1f9f   :  { %1157 = vmax.xlane.f32.xlu0 %v1156_v15 }
0x2012   :  { %v1158_v21 = vpop.xlane.xlu0 %1157 }
0x2013   :  { %vm1159_vm4 = vcmp.ge.f32.partialorder %v1140_v22, %v1158_v21 }
0x2014   :  { %v1160_v23 = vsel %vm1159_vm4, %v1912_v4, 16 }
0x2015   :  { %v1161_v1 = vsel %vm609_vm6, %v1160_v23, 2147483647 }
0x2016   :  { %v1163_v24 = vshra.s32 %v1161_v1, 16  ;;  %v1162_v29 = vand.u32 65535, %v1161_v1 }
0x2018   :  { %v1165_v26 = vcvt.s32.f32 %v1163_v24  ;;  %v1164_v32 = vcvt.s32.f32 %v1162_v29 }
0x201a   :  { %1166 = vmin.xlane.f32.xlu0 %v1165_v26 }
0x208d   :  { %v1167_v30 = vpop.xlane.xlu0 %1166 }
0x208e   :  { %vm1168_vm5 = vcmp.eq.f32.partialorder %v1165_v26, %v1167_v30  ;;  %v1173_v34 = vcvt.f32.s32 %v1167_v30 }
0x208f   :  { %v1169_v33 = vsel %vm1168_vm5, %v1164_v32, inf }
0x2090   :  { %1170 = vmin.xlane.f32.xlu1 %v1169_v33  ;;  %v1174_v36 = vshll.u32 %v1173_v34, 16 }
0x2103   :  { %v1171_v35 = vpop.xlane.xlu1 %1170 }
0x2104   :  { %v1172_v37 = vcvt.f32.s32 %v1171_v35 }
0x2106   :  { %v1175_v38 = vadd.s32 %v1174_v36, %v1172_v37 }
0x2108   :  { %vm1176_vm7 = vcmp.eq.s32.totalorder %v1912_v4, %v1175_v38 }
0x2109   :  { %v1644_v40 = vsel %vm1176_vm7, 1.0, %v1828_v39 }
0x210a   :  { %v1179_v16 = vpack.c.bf16 %v1644_v40, %v1644_v40 }
0x210c   :  { %1645 = vmatmul.msk.bf16.vlgmr.msra.gmra.mxu0 %vm609_vm6, %v1179_v16 }
0x2189   :  { %v1192_v41 = vpop.f32.mrf.mxu0 }
0x218a   :  { %v1193_v42 = vadd.f32 %v1902_v0, %v1192_v41 }
0x218c   :  { %1196 = vst [vmem:[#allocation2] sm:$0xff] %v1193_v42 }
0x2191   :  { %v1194_v43 = vpop.f32.mrf.mxu0 }
0x2192 PF:  { %1204 = vmatpush.bf16.msra.mxu0 %v2031_v28  ;;  %1262 = vmatpush.bf16.msra.mxu1 %v2073_v5  ;;  %s1650_s7 = sld [smem:[#allocation5 + $0x5]] }
0x2193   :  { %v1197_v44 = vld [vmem:[#allocation2] sm:$0xff] }
0x2196   :  { %1205 = vmatpush.bf16.msra.mxu0 %v2045_v31  ;;  %1263 = vmatpush.bf16.msra.mxu1 %v2080_v6 }
0x2198   :  { %p1651_p8 = scmp.ne.s32.totalorder %s1650_s7, 1 }
0x2199   :  { %1646 = vmatmul.msk.bf16.vlgmr.msra.gmra.mxu0 %vm121_vm0, %v1126_v47 }
0x2216   :  { %v1207_v45 = vpop.f32.mrf.mxu0 }
0x2217   :  { %v1211_v46 = vadd.f32 %v1207_v45, %v1197_v44 }
0x2219   :  { %1782 = vtanh.f32 %v1211_v46  ;;  %v1647_v49 = vmul.f32 -1.442695, %v1211_v46 }
0x221b   :  { %1784 = vpow2.f32 %v1647_v49 }
0x221e   :  { %v1209_v20 = vpop.f32.mrf.mxu0 }
0x221f   :  { %v1783_v48 = vpop.eup %1782 }
0x2220   :  { %1234 = vrot.lane.b32.xlu0 %v1783_v48, %s1822_s2 }
0x2221   :  { %v1785_v50 = vpop.eup %1784 }
0x2222   :  { %v1215_v51 = vadd.f32 1.0, %v1785_v50 }
0x2224   :  { %1786 = vrcp.f32 %v1215_v51  ;;  %v1227_v57 = vand.u32 2147483648, %v1215_v51  ;;  %vm1221_vm9 = vweird.f32 %v1215_v51  ;;  %v1225_v58 = vand.u32 2147483647, %v1215_v51 }
0x2226   :  { %v1228_v60 = vor.u32 1.1754944e-38, %v1227_v57  ;;  %vm1226_vm11 = vcmp.eq.f32.partialorder %v1225_v58, 8.507059e+37 }
0x222a   :  { %v1787_v52 = vpop.eup %1786 }
0x222b   :  { %v1217_v53 = vmul.f32 %v1787_v52, %v1215_v51  ;;  %vm1222_vm8 = vweird.f32 %v1787_v52 }
0x222c   :  { %vm1223_vm10 = vmor %vm1221_vm9, %vm1222_vm8 }
0x222d   :  { %v1218_v54 = vsub.f32 1.0, %v1217_v53 }
0x222f   :  { %v1219_v55 = vmul.f32 %v1787_v52, %v1218_v54 }
0x2231   :  { %v1220_v56 = vadd.f32 %v1787_v52, %v1219_v55 }
0x2233   :  { %v1224_v59 = vsel %vm1223_vm10, %v1787_v52, %v1220_v56 }
0x2234   :  { %v1229_v62 = vsel %vm1226_vm11, %v1228_v60, %v1224_v59 }
0x2235   :  { %v1232_v2 = vmul.f32 %v1229_v62, %v2175_v10 }
0x2292   :  { %v1235_v61 = vpop.permute.xlu0 %1234 }
0x2293   :  { %v1237_v63 = vmul.f32 %v1235_v61, %v1229_v62 }
0x2295   :  { %1239 = vrot.lane.b32.xlu0 %v1237_v63, %s1823_s6 }
0x2307   :  { %v1240_v3 = vpop.permute.xlu0 %1239 }
0x2308   :  { %v2201_v18 = vadd.f32 %v1240_v3, %v1232_v2 }
0x230a   :  { %1788 = vtanh.f32 %v2201_v18 }
0x2310   :  { %v1789_v7 = vpop.eup %1788 }
0x2311   :  { %1245 = vrot.lane.b32.xlu1 %v1789_v7, %s1822_s2 }
0x2383   :  { %v1246_v9 = vpop.permute.xlu1 %1245 }
0x2384   :  { %v1248_v11 = vmul.f32 %v1246_v9, %v1229_v62 }
0x2386   :  { %v1249_v12 = vpack.c.bf16 %v1248_v11, %v1248_v11 }
0x2388   :  { %1251 = vrot.lane.b32.xlu1 %v1249_v12, %s1823_s6 }
0x23fa   :  { %v1252_v13 = vpop.permute.xlu1 %1251 }
0x23fb   :  { %1648 = vmatmul.msk.bf16.vlgmr.msra.gmra.mxu1 %vm121_vm0, %v1252_v13 }
0x2478   :  { %v1265_v14 = vpop.f32.mrf.mxu1 }
0x2479   :  { %v1266_v10 = vadd.f32 %v2101_v25, %v1265_v14 }
0x247b   :  { %1649 = vst.msk [vmem:[%s2273_s12 + $0x28] sm:$0xff] %vm609_vm6, %v1266_v10 }
0x247c   :  { %1275 = sbr.rel (%p1651_p8) target bundleno = 9347 (0x2483), region = 89 }
0x2480   :  { %v1267_v47 = vpop.f32.mrf.mxu1 }
0x2481   :  { %v1276_v8 = vld [vmem:[#allocation4 + $0x20] sm:$0xff] }
0x2482   :  { %1277 = vst [vmem:[#allocation2] sm:$0xff] %v1276_v8 }
0x2483 PF:  { %p1652_p9 = scmp.ne.s32.totalorder %s1650_s7, 0 }
0x2485   :  { %1281 = sbr.rel (%p1652_p9) target bundleno = 9854 (0x267e), region = 93 }
0x248a   :  { %v1282_v22 = vsel %vm609_vm6, %v1266_v10, -inf  ;;  %1316 = vmatpush.bf16.msra.mxu0 %v2026_v27  ;;  %v1829_v36 = vmov 0.0  }
0x248b   :  { %1283 = vmax.xlane.f32.xlu0 %v1282_v22 }
0x24fe   :  { %v1284_v17 = vpop.xlane.xlu0 %1283 }
0x24ff   :  { %vm1285_vm12 = vcmp.ge.f32.partialorder %v1266_v10, %v1284_v17 }
0x2500   :  { %v1286_v19 = vsel %vm1285_vm12, %v1912_v4, 16 }
0x2501   :  { %v1287_v15 = vsel %vm609_vm6, %v1286_v19, 2147483647 }
0x2502   :  { %v1289_v21 = vshra.s32 %v1287_v15, 16  ;;  %v1288_v1 = vand.u32 65535, %v1287_v15 }
0x2504   :  { %v1291_v23 = vcvt.s32.f32 %v1289_v21  ;;  %v1290_v26 = vcvt.s32.f32 %v1288_v1 }
0x2506   :  { %1292 = vmin.xlane.f32.xlu0 %v1291_v23 }
0x2579   :  { %v1293_v24 = vpop.xlane.xlu0 %1292 }
0x257a   :  { %vm1294_vm13 = vcmp.eq.f32.partialorder %v1291_v23, %v1293_v24  ;;  %v1299_v30 = vcvt.f32.s32 %v1293_v24 }
0x257b   :  { %v1295_v29 = vsel %vm1294_vm13, %v1290_v26, inf }
0x257c   :  { %1296 = vmin.xlane.f32.xlu1 %v1295_v29  ;;  %v1300_v33 = vshll.u32 %v1299_v30, 16 }
0x25ef   :  { %v1297_v32 = vpop.xlane.xlu1 %1296 }
0x25f0   :  { %v1298_v34 = vcvt.f32.s32 %v1297_v32 }
0x25f2   :  { %v1301_v35 = vadd.s32 %v1300_v33, %v1298_v34 }
0x25f4   :  { %vm1302_vm14 = vcmp.eq.s32.totalorder %v1912_v4, %v1301_v35 }
0x25f5   :  { %v1653_v37 = vsel %vm1302_vm14, 1.0, %v1829_v36 }
0x25f6   :  { %v1305_v38 = vpack.c.bf16 %v1653_v37, %v1653_v37 }
0x25f8   :  { %1654 = vmatmul.msk.bf16.vlgmr.msra.gmra.mxu0 %vm609_vm6, %v1305_v38 }
0x2675   :  { %v1318_v39 = vpop.f32.mrf.mxu0 }
0x2676   :  { %v1319_v40 = vadd.f32 %v1902_v0, %v1318_v39 }
0x2678   :  { %1322 = vst [vmem:[#allocation2] sm:$0xff] %v1319_v40 }
0x267d   :  { %v1320_v16 = vpop.f32.mrf.mxu0 }
0x267e PF:  { %1330 = vmatpush.bf16.msra.mxu0 %v2031_v28  ;;  %1388 = vmatpush.bf16.msra.mxu1 %v2073_v5  ;;  %s1659_s14 = sld [smem:[#allocation5 + $0x6]] }
0x267f   :  { %v1323_v41 = vld [vmem:[#allocation2] sm:$0xff] }
0x2682   :  { %1331 = vmatpush.bf16.msra.mxu0 %v2045_v31  ;;  %1389 = vmatpush.bf16.msra.mxu1 %v2080_v6 }
0x2684   :  { %p1660_p10 = scmp.ne.s32.totalorder %s1659_s14, 1 }
0x2685   :  { %1655 = vmatmul.msk.bf16.vlgmr.msra.gmra.mxu0 %vm121_vm0, %v1252_v13 }
0x2702   :  { %v1333_v42 = vpop.f32.mrf.mxu0 }
0x2703   :  { %v1337_v43 = vadd.f32 %v1333_v42, %v1323_v41 }
0x2705   :  { %1790 = vtanh.f32 %v1337_v43  ;;  %v1656_v46 = vmul.f32 -1.442695, %v1337_v43 }
0x2707   :  { %1792 = vpow2.f32 %v1656_v46 }
0x270a   :  { %v1335_v44 = vpop.f32.mrf.mxu0 }
0x270b   :  { %v1791_v45 = vpop.eup %1790 }
0x270c   :  { %1360 = vrot.lane.b32.xlu0 %v1791_v45, %s1822_s2 }
0x270d   :  { %v1793_v20 = vpop.eup %1792 }
0x270e   :  { %v1341_v48 = vadd.f32 1.0, %v1793_v20 }
0x2710   :  { %1794 = vrcp.f32 %v1341_v48  ;;  %v1353_v54 = vand.u32 2147483648, %v1341_v48  ;;  %vm1347_vm1 = vweird.f32 %v1341_v48  ;;  %v1351_v55 = vand.u32 2147483647, %v1341_v48 }
0x2712   :  { %v1354_v57 = vor.u32 1.1754944e-38, %v1353_v54  ;;  %vm1352_vm3 = vcmp.eq.f32.partialorder %v1351_v55, 8.507059e+37 }
0x2716   :  { %v1795_v49 = vpop.eup %1794 }
0x2717   :  { %v1343_v50 = vmul.f32 %v1795_v49, %v1341_v48  ;;  %vm1348_vm15 = vweird.f32 %v1795_v49 }
0x2718   :  { %vm1349_vm2 = vmor %vm1347_vm1, %vm1348_vm15 }
0x2719   :  { %v1344_v51 = vsub.f32 1.0, %v1343_v50 }
0x271b   :  { %v1345_v52 = vmul.f32 %v1795_v49, %v1344_v51 }
0x271d   :  { %v1346_v53 = vadd.f32 %v1795_v49, %v1345_v52 }
0x271f   :  { %v1350_v56 = vsel %vm1349_vm2, %v1795_v49, %v1346_v53 }
0x2720   :  { %v1355_v59 = vsel %vm1352_vm3, %v1354_v57, %v1350_v56 }
0x2721   :  { %v1358_v61 = vmul.f32 %v1355_v59, %v2201_v18 }
0x277e   :  { %v1361_v58 = vpop.permute.xlu0 %1360 }
0x277f   :  { %v1363_v60 = vmul.f32 %v1361_v58, %v1355_v59 }
0x2781   :  { %1365 = vrot.lane.b32.xlu0 %v1363_v60, %s1823_s6 }
0x27f3   :  { %v1366_v62 = vpop.permute.xlu0 %1365 }
0x27f4   :  { %v2227_v63 = vadd.f32 %v1366_v62, %v1358_v61 }
0x27f6   :  { %1796 = vtanh.f32 %v2227_v63 }
0x27fc   :  { %v1797_v2 = vpop.eup %1796 }
0x27fd   :  { %1371 = vrot.lane.b32.xlu1 %v1797_v2, %s1822_s2 }
0x286f   :  { %v1372_v3 = vpop.permute.xlu1 %1371 }
0x2870   :  { %v1374_v7 = vmul.f32 %v1372_v3, %v1355_v59 }
0x2872   :  { %v1375_v9 = vpack.c.bf16 %v1374_v7, %v1374_v7 }
0x2874   :  { %1377 = vrot.lane.b32.xlu1 %v1375_v9, %s1823_s6 }
0x28e6   :  { %v1378_v11 = vpop.permute.xlu1 %1377 }
0x28e7   :  { %1657 = vmatmul.msk.bf16.vlgmr.msra.gmra.mxu1 %vm121_vm0, %v1378_v11 }
0x2964   :  { %v1391_v12 = vpop.f32.mrf.mxu1 }
0x2965   :  { %v1392_v18 = vadd.f32 %v2101_v25, %v1391_v12 }
0x2967   :  { %1658 = vst.msk [vmem:[%s2273_s12 + $0x30] sm:$0xff] %vm609_vm6, %v1392_v18 }
0x2968   :  { %1401 = sbr.rel (%p1660_p10) target bundleno = 10607 (0x296f), region = 97 }
0x296c   :  { %v1393_v13 = vpop.f32.mrf.mxu1 }
0x296d   :  { %v1402_v14 = vld [vmem:[#allocation4 + $0x28] sm:$0xff] }
0x296e   :  { %1403 = vst [vmem:[#allocation2] sm:$0xff] %v1402_v14 }
0x296f PF:  { %p1661_p11 = scmp.ne.s32.totalorder %s1659_s14, 0 }
0x2971   :  { %1407 = sbr.rel (%p1661_p11) target bundleno = 11114 (0x2b6a), region = 101 }
0x2976   :  { %v1408_v10 = vsel %vm609_vm6, %v1392_v18, -inf  ;;  %1442 = vmatpush.bf16.msra.mxu0 %v2026_v27  ;;  %v1830_v32 = vmov 0.0  }
0x2977   :  { %1409 = vmax.xlane.f32.xlu0 %v1408_v10 }
0x29ea   :  { %v1410_v47 = vpop.xlane.xlu0 %1409 }
0x29eb   :  { %vm1411_vm4 = vcmp.ge.f32.partialorder %v1392_v18, %v1410_v47 }
0x29ec   :  { %v1412_v8 = vsel %vm1411_vm4, %v1912_v4, 16 }
0x29ed   :  { %v1413_v22 = vsel %vm609_vm6, %v1412_v8, 2147483647 }
0x29ee   :  { %v1415_v17 = vshra.s32 %v1413_v22, 16  ;;  %v1414_v15 = vand.u32 65535, %v1413_v22 }
0x29f0   :  { %v1417_v19 = vcvt.s32.f32 %v1415_v17  ;;  %v1416_v23 = vcvt.s32.f32 %v1414_v15 }
0x29f2   :  { %1418 = vmin.xlane.f32.xlu0 %v1417_v19 }
0x2a65   :  { %v1419_v21 = vpop.xlane.xlu0 %1418 }
0x2a66   :  { %vm1420_vm5 = vcmp.eq.f32.partialorder %v1417_v19, %v1419_v21  ;;  %v1425_v24 = vcvt.f32.s32 %v1419_v21 }
0x2a67   :  { %v1421_v1 = vsel %vm1420_vm5, %v1416_v23, inf }
0x2a68   :  { %1422 = vmin.xlane.f32.xlu1 %v1421_v1  ;;  %v1426_v29 = vshll.u32 %v1425_v24, 16 }
0x2adb   :  { %v1423_v26 = vpop.xlane.xlu1 %1422 }
0x2adc   :  { %v1424_v27 = vcvt.f32.s32 %v1423_v26 }
0x2ade   :  { %v1427_v30 = vadd.s32 %v1426_v29, %v1424_v27 }
0x2ae0   :  { %vm1428_vm7 = vcmp.eq.s32.totalorder %v1912_v4, %v1427_v30 }
0x2ae1   :  { %v1662_v33 = vsel %vm1428_vm7, 1.0, %v1830_v32 }
0x2ae2   :  { %v1431_v34 = vpack.c.bf16 %v1662_v33, %v1662_v33 }
0x2ae4   :  { %1663 = vmatmul.msk.bf16.vlgmr.msra.gmra.mxu0 %vm609_vm6, %v1431_v34 }
0x2b61   :  { %v1444_v35 = vpop.f32.mrf.mxu0 }
0x2b62   :  { %v1445_v36 = vadd.f32 %v1902_v0, %v1444_v35 }
0x2b64   :  { %1448 = vst [vmem:[#allocation2] sm:$0xff] %v1445_v36 }
0x2b69   :  { %v1446_v37 = vpop.f32.mrf.mxu0 }
0x2b6a PF:  { %1456 = vmatpush.bf16.msra.mxu0 %v2031_v28  ;;  %1514 = vmatpush.bf16.msra.mxu1 %v2073_v5 }
0x2b6b   :  { %v1449_v4 = vld [vmem:[#allocation2] sm:$0xff] }
0x2b6e   :  { %1457 = vmatpush.bf16.msra.mxu0 %v2045_v31  ;;  %1515 = vmatpush.bf16.msra.mxu1 %v2080_v6 }
0x2b71   :  { %1664 = vmatmul.msk.bf16.vlgmr.msra.gmra.mxu0 %vm121_vm0, %v1378_v11 }
0x2bee   :  { %v1459_v38 = vpop.f32.mrf.mxu0 }
0x2bef   :  { %v1463_v39 = vadd.f32 %v1459_v38, %v1449_v4 }
0x2bf1   :  { %1798 = vtanh.f32 %v1463_v39  ;;  %v1665_v0 = vmul.f32 -1.442695, %v1463_v39 }
0x2bf3   :  { %1800 = vpow2.f32 %v1665_v0 }
0x2bf6   :  { %v1461_v40 = vpop.f32.mrf.mxu0 }
0x2bf7   :  { %v1799_v16 = vpop.eup %1798 }
0x2bf8   :  { %1486 = vrot.lane.b32.xlu0 %v1799_v16, %s1822_s2 }
0x2bf9   :  { %v1801_v41 = vpop.eup %1800 }
0x2bfa   :  { %v1467_v28 = vadd.f32 1.0, %v1801_v41 }
0x2bfc   :  { %1802 = vrcp.f32 %v1467_v28  ;;  %v1479_v44 = vand.u32 2147483648, %v1467_v28  ;;  %vm1473_vm9 = vweird.f32 %v1467_v28  ;;  %v1477_v45 = vand.u32 2147483647, %v1467_v28 }
0x2bfe   :  { %v1480_v20 = vor.u32 1.1754944e-38, %v1479_v44  ;;  %vm1478_vm11 = vcmp.eq.f32.partialorder %v1477_v45, 8.507059e+37 }
0x2c02   :  { %v1803_v5 = vpop.eup %1802 }
0x2c03   :  { %v1469_v42 = vmul.f32 %v1803_v5, %v1467_v28  ;;  %vm1474_vm8 = vweird.f32 %v1803_v5 }
0x2c04   :  { %vm1475_vm10 = vmor %vm1473_vm9, %vm1474_vm8 }
0x2c05   :  { %v1470_v31 = vsub.f32 1.0, %v1469_v42 }
0x2c07   :  { %v1471_v43 = vmul.f32 %v1803_v5, %v1470_v31 }
0x2c09   :  { %v1472_v6 = vadd.f32 %v1803_v5, %v1471_v43 }
0x2c0b   :  { %v1476_v46 = vsel %vm1475_vm10, %v1803_v5, %v1472_v6 }
0x2c0c   :  { %v1481_v49 = vsel %vm1478_vm11, %v1480_v20, %v1476_v46 }
0x2c0d   :  { %v1484_v51 = vmul.f32 %v1481_v49, %v2227_v63 }
0x2c6a   :  { %v1487_v48 = vpop.permute.xlu0 %1486 }
0x2c6b   :  { %v1489_v50 = vmul.f32 %v1487_v48, %v1481_v49 }
0x2c6d   :  { %1491 = vrot.lane.b32.xlu0 %v1489_v50, %s1823_s6 }
0x2cdf   :  { %v1492_v52 = vpop.permute.xlu0 %1491 }
0x2ce0   :  { %v1494_v53 = vadd.f32 %v1492_v52, %v1484_v51 }
0x2ce2   :  { %1804 = vtanh.f32 %v1494_v53 }
0x2ce8   :  { %v1805_v54 = vpop.eup %1804 }
0x2ce9   :  { %1497 = vrot.lane.b32.xlu1 %v1805_v54, %s1822_s2 }
0x2d5b   :  { %v1498_v55 = vpop.permute.xlu1 %1497 }
0x2d5c   :  { %v1500_v56 = vmul.f32 %v1498_v55, %v1481_v49 }
0x2d5e   :  { %v1501_v57 = vpack.c.bf16 %v1500_v56, %v1500_v56 }
0x2d60   :  { %1503 = vrot.lane.b32.xlu1 %v1501_v57, %s1823_s6 }
0x2dd2   :  { %v1504_v58 = vpop.permute.xlu1 %1503 }
0x2dd3   :  { %1666 = vmatmul.msk.bf16.vlgmr.msra.gmra.mxu1 %vm121_vm0, %v1504_v58 }
0x2e50   :  { %v1517_v59 = vpop.f32.mrf.mxu1 }
0x2e51   :  { %v1518_v60 = vadd.f32 %v2101_v25, %v1517_v59 }
0x2e53   :  { %1667 = vst.msk [vmem:[%s2273_s12 + $0x38] sm:$0xff] %vm609_vm6, %v1518_v60 }
0x2e58   :  { %v1519_v61 = vpop.f32.mrf.mxu1 }
0x2e59   :  { %1527 = vsyncpa [#allocation6], 1 }

</bundles_post_ra>
